<compile_context>
chip_gen: v5e
topology: v5e:2x2
jax: 0.10.0
libtpu: 0.0.40
codegen_flags: <defaults>
</compile_context>

<pallas_src>
import jax
import jax.numpy as jnp
import numpy as np
from jax import lax
from jax.experimental import pallas as pl
from jax.experimental.pallas import tpu as pltpu

HIDDEN = 32        # hidden_size
NUM_LAYERS = 3     # num_layers
VOCAB = 64         # N = input_size = output_size
SEQ = 8            # sequence length L

PB = 128                       # per-gate lane block (vreg aligned): 3*H used + 32 pad
GW = 4 * PB                    # packed gate width:  [ i | f | g | o ] blocks
NWF = SEQ + NUM_LAYERS - 1     # number of wavefront steps (8 + 2 = 10)
OUT_PAD = 128                  # lane-dense padded logits width (>= VOCAB)


def _decoder_kernel(ids_ref, xtab_ref, img_ref,
                    w0i_ref, bias_ref, wf_ref,
                    fcw_ref, fcb_ref,
                    logits_ref, hc_ref,
                    pre_scr, seq_scr):
    H, L, NL = HIDDEN, SEQ, NUM_LAYERS

    # ---- prologue (one-time, off the recurrence critical path) ------------
    # Embedding gather + ReLU + layer-0 input projection folded into a single
    # one-hot matmul against the host-precomputed relu(embed)@W_ih0x table.
    ids = ids_ref[...]                                              # (L, 1) i32
    iota = lax.broadcasted_iota(jnp.int32, (L, VOCAB), 1)
    onehot = (iota == ids).astype(jnp.float32)                      # (L, V)
    # TODO(synk): Dropout(p=0.1) after ReLU is stochastic in train mode;
    #             implemented with eval-mode (identity) semantics.

    # Layer-0 input gates for every timestep + all per-layer biases, already
    # in the padded (i|f|g|o) x (layer-lane) layout and pre-scaled by 0.5 on
    # the i/f/o blocks (tanh-form sigmoid).  concat([x, img]) stays folded
    # into two dots (no in-kernel lane concat).
    pre_scr[...] = (
        jnp.dot(onehot, xtab_ref[...], preferred_element_type=jnp.float32)
        + jnp.dot(img_ref[...], w0i_ref[...], preferred_element_type=jnp.float32)
        + bias_ref[...])                                            # (L, GW)

    # Loop-invariant edge-wavefront masks (hoisted off the h/c dep chain).
    lane = lax.broadcasted_iota(jnp.int32, (1, PB), 1)
    edge_mask = {}
    for s in range(NWF):
        lo = max(0, s - (L - 1))
        hi = min(NL - 1, s)
        if not (lo == 0 and hi == NL - 1):
            edge_mask[s] = (lane >= lo * H) & (lane < (hi + 1) * H)

    # packed state: lanes [32*l, 32*l+32) hold layer l; lanes 96..127 are pad
    h = jnp.zeros((1, PB), jnp.float32)
    c = jnp.zeros((1, PB), jnp.float32)

    # ---- fused 3-layer wavefront recurrence, statically unrolled ----------
    # Wavefront step s computes (layer l, time t = s - l) for every valid l
    # with a single (1,128)x(128,512) matmul: block (l,l) of wf = W_hh_l,
    # block (l-1,l) = W_ih_l, zero rows/cols elsewhere (pad lanes can't leak).
    for s in range(NWF):
        g = pre_scr[pl.ds(min(s, L - 1), 1), :] + jnp.dot(
            h, wf_ref[...], preferred_element_type=jnp.float32)     # (1, GW)

        # ONE tanh over the full packed gate vector (i/f/o pre-scaled by 0.5),
        # then pure-VPU fma per vreg-aligned block:
        #   sigmoid(a) = 0.5 + 0.5 * tanh(a / 2)
        t = jnp.tanh(g)
        i_g = 0.5 + 0.5 * t[:, 0 * PB:1 * PB]
        f_g = 0.5 + 0.5 * t[:, 1 * PB:2 * PB]
        g_g = t[:, 2 * PB:3 * PB]
        o_g = 0.5 + 0.5 * t[:, 3 * PB:4 * PB]
        c_new = f_g * c + i_g * g_g
        h_new = o_g * jnp.tanh(c_new)

        if s in edge_mask:                # only the 4 edge wavefronts mask
            m = edge_mask[s]
            h = jnp.where(m, h_new, h)
            c = jnp.where(m, c_new, c)
        else:                             # interior wavefronts: full update
            h, c = h_new, c_new

        t_top = s - (NL - 1)              # top-layer timestep this wavefront
        if 0 <= t_top < L:                # static guard (scratch store only,
            seq_scr[pl.ds(t_top, 1), :] = h_new   # not on the dep chain)

    # ---- epilogue: single lane-dense stores --------------------------------
    # fcw is zero outside rows [64, 96), so the full packed seq buffer can be
    # fed straight to the MXU (top layer lives in lanes 64..95).  The fc
    # output is padded to 128 lanes -> unmasked vst.
    logits_ref[...] = (
        jnp.dot(seq_scr[...], fcw_ref[...], preferred_element_type=jnp.float32)
        + fcb_ref[...])
    hc_ref[pl.ds(0, 1), :] = h
    hc_ref[pl.ds(1, 1), :] = c


def pack_params(params):
    """One-time host-side packing into the padded wavefront layout."""
    H, NL, V = HIDDEN, NUM_LAYERS, VOCAB

    def scatter_cols(w_4h, layer):
        # (rows, 4H) in PyTorch gate order i,f,g,o -> (rows, GW) with gate k
        # placed at columns [PB*k + H*layer, PB*k + H*(layer+1)).
        w_4h = np.asarray(w_4h, np.float32)
        out = np.zeros((w_4h.shape[0], GW), np.float32)
        for k in range(4):
            out[:, PB * k + H * layer: PB * k + H * (layer + 1)] = \
                w_4h[:, H * k: H * (k + 1)]
        return out

    def gate_scale(a):
        # Pre-scale i/f/o gate columns by 0.5 so the kernel can use
        # sigmoid(x) = 0.5 + 0.5 * tanh(0.5 * x) with a single tanh.
        a = np.array(a, np.float32, copy=True)
        for k in (0, 1, 3):
            a[:, PB * k: PB * (k + 1)] *= 0.5
        return a

    # Fused wavefront matrix: rows = packed h lanes, cols = packed gates.
    #   block (l, l)   -> W_hh of layer l
    #   block (l-1, l) -> W_ih of layer l (l >= 1)
    wf = np.zeros((PB, GW), np.float32)
    for l in range(NL):
        whh = params["whh0"] if l == 0 else params["whh_r"][l - 1]
        wf[H * l: H * (l + 1), :] += scatter_cols(whh, l)
        if l >= 1:
            wf[H * (l - 1): H * l, :] += scatter_cols(params["wih_r"][l - 1], l)

    bias = scatter_cols(params["b0"], 0)
    for l in range(1, NL):
        bias += scatter_cols(params["b_r"][l - 1], l)

    # Fold relu(embed) @ W_ih0x host-side (ReLU commutes with one-hot select).
    xtab = np.maximum(np.asarray(params["embed"], np.float32), 0.0) @ \
        scatter_cols(params["wih0x"], 0)                           # (V, GW)

    # Lane-dense fc: pad output to 128 lanes, zero rows outside the top layer.
    fcw = np.zeros((PB, OUT_PAD), np.float32)
    fcw[H * (NL - 1): H * NL, :V] = np.asarray(params["fc_w"], np.float32)
    fcb = np.zeros((1, OUT_PAD), np.float32)
    fcb[:, :V] = np.asarray(params["fc_b"], np.float32)

    return {
        "xtab": jnp.asarray(gate_scale(xtab)),                      # (V, GW)
        "w0i":  jnp.asarray(gate_scale(scatter_cols(params["wih0i"], 0))),
        "bias": jnp.asarray(gate_scale(bias)),                      # (1, GW)
        "wf":   jnp.asarray(gate_scale(wf)),                        # (PB, GW)
        "fcw":  jnp.asarray(fcw),                                   # (PB, 128)
        "fcb":  jnp.asarray(fcb),                                   # (1, 128)
    }


@jax.jit
def decoder_forward(x_ids, h, c, img, packed):
    # forward() discards the provided (h, c) and reinitializes them to zeros,
    # exactly as the PyTorch module does via init_hidden().
    del h, c
    L = x_ids.shape[0]
    ids2d = x_ids.reshape(L, 1).astype(jnp.int32)

    vmem = pl.BlockSpec(memory_space=pltpu.MemorySpace.VMEM)
    logits_pad, hc = pl.pallas_call(
        _decoder_kernel,
        out_shape=(jax.ShapeDtypeStruct((L, OUT_PAD), jnp.float32),
                   jax.ShapeDtypeStruct((2, PB), jnp.float32)),
        in_specs=[vmem] * 8,
        out_specs=(vmem, vmem),
        scratch_shapes=[
            pltpu.VMEM((L, GW), jnp.float32),   # packed per-timestep input gates
            pltpu.VMEM((L, PB), jnp.float32),   # packed per-timestep hidden seq
        ],
    )(ids2d, packed["xtab"], img, packed["w0i"], packed["bias"],
      packed["wf"], packed["fcw"], packed["fcb"])

    logits = logits_pad[:, :VOCAB]
    h_n = hc[0, :NUM_LAYERS * HIDDEN].reshape(NUM_LAYERS, HIDDEN)
    c_n = hc[1, :NUM_LAYERS * HIDDEN].reshape(NUM_LAYERS, HIDDEN)
    return logits, h_n, c_n


def make_params(key):
    H, H4, V = HIDDEN, 4 * HIDDEN, VOCAB
    ks = jax.random.split(key, 10)
    scale = 0.1
    return {
        "embed": jax.random.normal(ks[0], (V, H), jnp.float32) * scale,
        # layer 0: W_ih has input size 2H; stored as two (H, 4H) halves.
        "wih0x": jax.random.normal(ks[1], (H, H4), jnp.float32) * scale,
        "wih0i": jax.random.normal(ks[2], (H, H4), jnp.float32) * scale,
        "whh0":  jax.random.normal(ks[3], (H, H4), jnp.float32) * scale,
        "b0":    jax.random.normal(ks[4], (1, H4), jnp.float32) * scale,  # b_ih+b_hh
        # layers 1..2 stacked.
        "wih_r": jax.random.normal(ks[5], (NUM_LAYERS - 1, H, H4), jnp.float32) * scale,
        "whh_r": jax.random.normal(ks[6], (NUM_LAYERS - 1, H, H4), jnp.float32) * scale,
        "b_r":   jax.random.normal(ks[7], (NUM_LAYERS - 1, 1, H4), jnp.float32) * scale,
        "fc_w":  jax.random.normal(ks[8], (H, V), jnp.float32) * scale,
        "fc_b":  jax.random.normal(ks[9], (1, V), jnp.float32) * scale,
    }


def reference(x_ids, img, params):
    """Pure-JAX reference with identical semantics (for correctness check)."""
    H = HIDDEN
    x = jnp.maximum(params["embed"][x_ids], 0.0)
    seq = jnp.concatenate([x, img], axis=1)

    def lstm_layer(seq_in, wih, whh, b):
        def step(carry, xt):
            h, c = carry
            g = xt @ wih + h @ whh + b[0]
            i = jax.nn.sigmoid(g[:H]); f = jax.nn.sigmoid(g[H:2 * H])
            gg = jnp.tanh(g[2 * H:3 * H]); o = jax.nn.sigmoid(g[3 * H:])
            c = f * c + i * gg
            h = o * jnp.tanh(c)
            return (h, c), h
        (h, c), ys = lax.scan(step, (jnp.zeros(H), jnp.zeros(H)), seq_in)
        return ys, h, c

    wih0 = jnp.concatenate([params["wih0x"], params["wih0i"]], axis=0)
    seq, h0, c0 = lstm_layer(seq, wih0, params["whh0"], params["b0"])
    hs, cs = [h0], [c0]
    for l in range(1, NUM_LAYERS):
        seq, hl, cl = lstm_layer(seq, params["wih_r"][l - 1],
                                 params["whh_r"][l - 1], params["b_r"][l - 1])
        hs.append(hl); cs.append(cl)
    logits = seq @ params["fc_w"] + params["fc_b"][0]
    return logits, jnp.stack(hs), jnp.stack(cs)


if __name__ == "__main__":
    key = jax.random.PRNGKey(0)
    k_p, k_x, k_img = jax.random.split(key, 3)
    params = make_params(k_p)
    packed = pack_params(params)        # one-time layout packing (host side)

    x_ids = jax.random.randint(k_x, (SEQ,), 0, VOCAB, dtype=jnp.int32)
    img = jax.random.normal(k_img, (SEQ, HIDDEN), jnp.float32)
    h_in = jnp.zeros((NUM_LAYERS, HIDDEN), jnp.float32)   # ignored (re-inited)
    c_in = jnp.zeros((NUM_LAYERS, HIDDEN), jnp.float32)   # ignored (re-inited)

    logits, h_n, c_n = decoder_forward(x_ids, h_in, c_in, img, packed)
    jax.block_until_ready((logits, h_n, c_n))

    ref_logits, ref_h, ref_c = reference(x_ids, img, params)
    np.testing.assert_allclose(np.asarray(logits), np.asarray(ref_logits),
                               rtol=1e-4, atol=1e-4)
    np.testing.assert_allclose(np.asarray(h_n), np.asarray(ref_h),
                               rtol=1e-4, atol=1e-4)
    np.testing.assert_allclose(np.asarray(c_n), np.asarray(ref_c),
                               rtol=1e-4, atol=1e-4)
    print("KERNEL_OK")
</pallas_src>

<mosaic_0001>
module attributes {stable_mosaic.version = 11 : i64} {
  func.func @_decoder_kernel(%arg0: memref<8x1xi32, #tpu.memory_space<vmem>>, %arg1: memref<64x512xf32, #tpu.memory_space<vmem>>, %arg2: memref<8x32xf32, #tpu.memory_space<vmem>>, %arg3: memref<32x512xf32, #tpu.memory_space<vmem>>, %arg4: memref<1x512xf32, #tpu.memory_space<vmem>>, %arg5: memref<128x512xf32, #tpu.memory_space<vmem>>, %arg6: memref<128x128xf32, #tpu.memory_space<vmem>>, %arg7: memref<1x128xf32, #tpu.memory_space<vmem>>, %arg8: memref<8x128xf32, #tpu.memory_space<vmem>>, %arg9: memref<2x128xf32, #tpu.memory_space<vmem>>, %arg10: memref<8x512xf32, #tpu.memory_space<vmem>>, %arg11: memref<8x128xf32, #tpu.memory_space<vmem>>) attributes {dimension_semantics = [], scalar_prefetch = 0 : i64, scratch_operands = 2 : i64, tpu.core_type = #tpu.core_type<tc>} {
    %c0 = arith.constant 0 : index
    %c0_0 = arith.constant 0 : index
    %0 = vector.load %arg0[%c0, %c0_0] : memref<8x1xi32, #tpu.memory_space<vmem>>, vector<8x1xi32>
    %1 = tpu.iota {dimensions = array<i32: 1>} : vector<8x64xi32>
    %2 = vector.broadcast %0 : vector<8x1xi32> to vector<8x64xi32>
    %3 = arith.cmpi eq, %1, %2 : vector<8x64xi32>
    %4 = arith.extui %3 : vector<8x64xi1> to vector<8x64xi32>
    %5 = arith.sitofp %4 : vector<8x64xi32> to vector<8x64xf32>
    %c0_1 = arith.constant 0 : index
    %c0_2 = arith.constant 0 : index
    %6 = vector.load %arg1[%c0_1, %c0_2] : memref<64x512xf32, #tpu.memory_space<vmem>>, vector<64x512xf32>
    %cst = arith.constant dense<0.000000e+00> : vector<8x512xf32>
    %7 = tpu.matmul %5, %6, %cst {dimension_numbers = #tpu.dot_dimension_numbers<[1], [0], [0], [1], [0, 0, 1, 1], [], []>} : vector<8x64xf32>, vector<64x512xf32>, vector<8x512xf32> -> vector<8x512xf32>
    %c0_3 = arith.constant 0 : index
    %c0_4 = arith.constant 0 : index
    %8 = vector.load %arg2[%c0_3, %c0_4] : memref<8x32xf32, #tpu.memory_space<vmem>>, vector<8x32xf32>
    %c0_5 = arith.constant 0 : index
    %c0_6 = arith.constant 0 : index
    %9 = vector.load %arg3[%c0_5, %c0_6] : memref<32x512xf32, #tpu.memory_space<vmem>>, vector<32x512xf32>
    %cst_7 = arith.constant dense<0.000000e+00> : vector<8x512xf32>
    %10 = tpu.matmul %8, %9, %cst_7 {dimension_numbers = #tpu.dot_dimension_numbers<[1], [0], [0], [1], [0, 0, 1, 1], [], []>} : vector<8x32xf32>, vector<32x512xf32>, vector<8x512xf32> -> vector<8x512xf32>
    %11 = arith.addf %7, %10 : vector<8x512xf32>
    %c0_8 = arith.constant 0 : index
    %c0_9 = arith.constant 0 : index
    %12 = vector.load %arg4[%c0_8, %c0_9] : memref<1x512xf32, #tpu.memory_space<vmem>>, vector<1x512xf32>
    %13 = vector.broadcast %12 : vector<1x512xf32> to vector<8x512xf32>
    %14 = arith.addf %11, %13 : vector<8x512xf32>
    %c0_10 = arith.constant 0 : index
    %c0_11 = arith.constant 0 : index
    %15 = vector.load %arg10[%c0_10, %c0_11] : memref<8x512xf32, #tpu.memory_space<vmem>>, vector<8x512xf32>
    tpu.vector_store %arg10[%c0_10, %c0_11], %14 {strides = array<i32>} : memref<8x512xf32, #tpu.memory_space<vmem>>, vector<8x512xf32>,
    %16 = tpu.iota {dimensions = array<i32: 1>} : vector<1x128xi32>
    %c0_i32 = arith.constant 0 : i32
    %17 = vector.broadcast %c0_i32 : i32 to vector<1x128xi32>
    %18 = arith.cmpi sge, %16, %17 : vector<1x128xi32>
    %c32_i32 = arith.constant 32 : i32
    %19 = vector.broadcast %c32_i32 : i32 to vector<1x128xi32>
    %20 = arith.cmpi slt, %16, %19 : vector<1x128xi32>
    %21 = arith.andi %18, %20 : vector<1x128xi1>
    %c0_i32_12 = arith.constant 0 : i32
    %22 = vector.broadcast %c0_i32_12 : i32 to vector<1x128xi32>
    %23 = arith.cmpi sge, %16, %22 : vector<1x128xi32>
    %c64_i32 = arith.constant 64 : i32
    %24 = vector.broadcast %c64_i32 : i32 to vector<1x128xi32>
    %25 = arith.cmpi slt, %16, %24 : vector<1x128xi32>
    %26 = arith.andi %23, %25 : vector<1x128xi1>
    %c32_i32_13 = arith.constant 32 : i32
    %27 = vector.broadcast %c32_i32_13 : i32 to vector<1x128xi32>
    %28 = arith.cmpi sge, %16, %27 : vector<1x128xi32>
    %c96_i32 = arith.constant 96 : i32
    %29 = vector.broadcast %c96_i32 : i32 to vector<1x128xi32>
    %30 = arith.cmpi slt, %16, %29 : vector<1x128xi32>
    %31 = arith.andi %28, %30 : vector<1x128xi1>
    %c64_i32_14 = arith.constant 64 : i32
    %32 = vector.broadcast %c64_i32_14 : i32 to vector<1x128xi32>
    %33 = arith.cmpi sge, %16, %32 : vector<1x128xi32>
    %c96_i32_15 = arith.constant 96 : i32
    %34 = vector.broadcast %c96_i32_15 : i32 to vector<1x128xi32>
    %35 = arith.cmpi slt, %16, %34 : vector<1x128xi32>
    %36 = arith.andi %33, %35 : vector<1x128xi1>
    %cst_16 = arith.constant 0.000000e+00 : f32
    %37 = vector.broadcast %cst_16 : f32 to vector<1x128xf32>
    %cst_17 = arith.constant 0.000000e+00 : f32
    %38 = vector.broadcast %cst_17 : f32 to vector<1x128xf32>
    %c0_18 = arith.constant 0 : index
    %c0_19 = arith.constant 0 : index
    %39 = vector.load %arg10[%c0_18, %c0_19] : memref<8x512xf32, #tpu.memory_space<vmem>>, vector<1x512xf32>
    %c0_20 = arith.constant 0 : index
    %c0_21 = arith.constant 0 : index
    %40 = vector.load %arg5[%c0_20, %c0_21] : memref<128x512xf32, #tpu.memory_space<vmem>>, vector<128x512xf32>
    %cst_22 = arith.constant dense<0.000000e+00> : vector<1x512xf32>
    %41 = tpu.matmul %37, %40, %cst_22 {dimension_numbers = #tpu.dot_dimension_numbers<[1], [0], [0], [1], [0, 0, 1, 1], [], []>} : vector<1x128xf32>, vector<128x512xf32>, vector<1x512xf32> -> vector<1x512xf32>
    %42 = arith.addf %39, %41 : vector<1x512xf32>
    %43 = math.tanh %42 : vector<1x512xf32>
    %44 = vector.extract_strided_slice %43 {offsets = [0, 0], sizes = [1, 128], strides = [1, 1]} : vector<1x512xf32> to vector<1x128xf32>
    %cst_23 = arith.constant 5.000000e-01 : f32
    %45 = vector.broadcast %cst_23 : f32 to vector<1x128xf32>
    %46 = arith.mulf %45, %44 : vector<1x128xf32>
    %cst_24 = arith.constant 5.000000e-01 : f32
    %47 = vector.broadcast %cst_24 : f32 to vector<1x128xf32>
    %48 = arith.addf %47, %46 : vector<1x128xf32>
    %49 = vector.extract_strided_slice %43 {offsets = [0, 128], sizes = [1, 128], strides = [1, 1]} : vector<1x512xf32> to vector<1x128xf32>
    %cst_25 = arith.constant 5.000000e-01 : f32
    %50 = vector.broadcast %cst_25 : f32 to vector<1x128xf32>
    %51 = arith.mulf %50, %49 : vector<1x128xf32>
    %cst_26 = arith.constant 5.000000e-01 : f32
    %52 = vector.broadcast %cst_26 : f32 to vector<1x128xf32>
    %53 = arith.addf %52, %51 : vector<1x128xf32>
    %54 = vector.extract_strided_slice %43 {offsets = [0, 256], sizes = [1, 128], strides = [1, 1]} : vector<1x512xf32> to vector<1x128xf32>
    %55 = vector.extract_strided_slice %43 {offsets = [0, 384], sizes = [1, 128], strides = [1, 1]} : vector<1x512xf32> to vector<1x128xf32>
    %cst_27 = arith.constant 5.000000e-01 : f32
    %56 = vector.broadcast %cst_27 : f32 to vector<1x128xf32>
    %57 = arith.mulf %56, %55 : vector<1x128xf32>
    %cst_28 = arith.constant 5.000000e-01 : f32
    %58 = vector.broadcast %cst_28 : f32 to vector<1x128xf32>
    %59 = arith.addf %58, %57 : vector<1x128xf32>
    %60 = arith.mulf %53, %38 : vector<1x128xf32>
    %61 = arith.mulf %48, %54 : vector<1x128xf32>
    %62 = arith.addf %60, %61 : vector<1x128xf32>
    %63 = math.tanh %62 : vector<1x128xf32>
    %64 = arith.mulf %59, %63 : vector<1x128xf32>
    %65 = arith.select %21, %64, %37 : vector<1x128xi1>, vector<1x128xf32>
    %66 = arith.select %21, %62, %38 : vector<1x128xi1>, vector<1x128xf32>
    %c1 = arith.constant 1 : index
    %c0_29 = arith.constant 0 : index
    %67 = vector.load %arg10[%c1, %c0_29] : memref<8x512xf32, #tpu.memory_space<vmem>>, vector<1x512xf32>
    %c0_30 = arith.constant 0 : index
    %c0_31 = arith.constant 0 : index
    %68 = vector.load %arg5[%c0_30, %c0_31] : memref<128x512xf32, #tpu.memory_space<vmem>>, vector<128x512xf32>
    %cst_32 = arith.constant dense<0.000000e+00> : vector<1x512xf32>
    %69 = tpu.matmul %65, %68, %cst_32 {dimension_numbers = #tpu.dot_dimension_numbers<[1], [0], [0], [1], [0, 0, 1, 1], [], []>} : vector<1x128xf32>, vector<128x512xf32>, vector<1x512xf32> -> vector<1x512xf32>
    %70 = arith.addf %67, %69 : vector<1x512xf32>
    %71 = math.tanh %70 : vector<1x512xf32>
    %72 = vector.extract_strided_slice %71 {offsets = [0, 0], sizes = [1, 128], strides = [1, 1]} : vector<1x512xf32> to vector<1x128xf32>
    %cst_33 = arith.constant 5.000000e-01 : f32
    %73 = vector.broadcast %cst_33 : f32 to vector<1x128xf32>
    %74 = arith.mulf %73, %72 : vector<1x128xf32>
    %cst_34 = arith.constant 5.000000e-01 : f32
    %75 = vector.broadcast %cst_34 : f32 to vector<1x128xf32>
    %76 = arith.addf %75, %74 : vector<1x128xf32>
    %77 = vector.extract_strided_slice %71 {offsets = [0, 128], sizes = [1, 128], strides = [1, 1]} : vector<1x512xf32> to vector<1x128xf32>
    %cst_35 = arith.constant 5.000000e-01 : f32
    %78 = vector.broadcast %cst_35 : f32 to vector<1x128xf32>
    %79 = arith.mulf %78, %77 : vector<1x128xf32>
    %cst_36 = arith.constant 5.000000e-01 : f32
    %80 = vector.broadcast %cst_36 : f32 to vector<1x128xf32>
    %81 = arith.addf %80, %79 : vector<1x128xf32>
    %82 = vector.extract_strided_slice %71 {offsets = [0, 256], sizes = [1, 128], strides = [1, 1]} : vector<1x512xf32> to vector<1x128xf32>
    %83 = vector.extract_strided_slice %71 {offsets = [0, 384], sizes = [1, 128], strides = [1, 1]} : vector<1x512xf32> to vector<1x128xf32>
    %cst_37 = arith.constant 5.000000e-01 : f32
    %84 = vector.broadcast %cst_37 : f32 to vector<1x128xf32>
    %85 = arith.mulf %84, %83 : vector<1x128xf32>
    %cst_38 = arith.constant 5.000000e-01 : f32
    %86 = vector.broadcast %cst_38 : f32 to vector<1x128xf32>
    %87 = arith.addf %86, %85 : vector<1x128xf32>
    %88 = arith.mulf %81, %66 : vector<1x128xf32>
    %89 = arith.mulf %76, %82 : vector<1x128xf32>
    %90 = arith.addf %88, %89 : vector<1x128xf32>
    %91 = math.tanh %90 : vector<1x128xf32>
    %92 = arith.mulf %87, %91 : vector<1x128xf32>
    %93 = arith.select %26, %92, %65 : vector<1x128xi1>, vector<1x128xf32>
    %94 = arith.select %26, %90, %66 : vector<1x128xi1>, vector<1x128xf32>
    %c2 = arith.constant 2 : index
    %c0_39 = arith.constant 0 : index
    %95 = vector.load %arg10[%c2, %c0_39] : memref<8x512xf32, #tpu.memory_space<vmem>>, vector<1x512xf32>
    %c0_40 = arith.constant 0 : index
    %c0_41 = arith.constant 0 : index
    %96 = vector.load %arg5[%c0_40, %c0_41] : memref<128x512xf32, #tpu.memory_space<vmem>>, vector<128x512xf32>
    %cst_42 = arith.constant dense<0.000000e+00> : vector<1x512xf32>
    %97 = tpu.matmul %93, %96, %cst_42 {dimension_numbers = #tpu.dot_dimension_numbers<[1], [0], [0], [1], [0, 0, 1, 1], [], []>} : vector<1x128xf32>, vector<128x512xf32>, vector<1x512xf32> -> vector<1x512xf32>
    %98 = arith.addf %95, %97 : vector<1x512xf32>
    %99 = math.tanh %98 : vector<1x512xf32>
    %100 = vector.extract_strided_slice %99 {offsets = [0, 0], sizes = [1, 128], strides = [1, 1]} : vector<1x512xf32> to vector<1x128xf32>
    %cst_43 = arith.constant 5.000000e-01 : f32
    %101 = vector.broadcast %cst_43 : f32 to vector<1x128xf32>
    %102 = arith.mulf %101, %100 : vector<1x128xf32>
    %cst_44 = arith.constant 5.000000e-01 : f32
    %103 = vector.broadcast %cst_44 : f32 to vector<1x128xf32>
    %104 = arith.addf %103, %102 : vector<1x128xf32>
    %105 = vector.extract_strided_slice %99 {offsets = [0, 128], sizes = [1, 128], strides = [1, 1]} : vector<1x512xf32> to vector<1x128xf32>
    %cst_45 = arith.constant 5.000000e-01 : f32
    %106 = vector.broadcast %cst_45 : f32 to vector<1x128xf32>
    %107 = arith.mulf %106, %105 : vector<1x128xf32>
    %cst_46 = arith.constant 5.000000e-01 : f32
    %108 = vector.broadcast %cst_46 : f32 to vector<1x128xf32>
    %109 = arith.addf %108, %107 : vector<1x128xf32>
    %110 = vector.extract_strided_slice %99 {offsets = [0, 256], sizes = [1, 128], strides = [1, 1]} : vector<1x512xf32> to vector<1x128xf32>
    %111 = vector.extract_strided_slice %99 {offsets = [0, 384], sizes = [1, 128], strides = [1, 1]} : vector<1x512xf32> to vector<1x128xf32>
    %cst_47 = arith.constant 5.000000e-01 : f32
    %112 = vector.broadcast %cst_47 : f32 to vector<1x128xf32>
    %113 = arith.mulf %112, %111 : vector<1x128xf32>
    %cst_48 = arith.constant 5.000000e-01 : f32
    %114 = vector.broadcast %cst_48 : f32 to vector<1x128xf32>
    %115 = arith.addf %114, %113 : vector<1x128xf32>
    %116 = arith.mulf %109, %94 : vector<1x128xf32>
    %117 = arith.mulf %104, %110 : vector<1x128xf32>
    %118 = arith.addf %116, %117 : vector<1x128xf32>
    %119 = math.tanh %118 : vector<1x128xf32>
    %120 = arith.mulf %115, %119 : vector<1x128xf32>
    %c0_49 = arith.constant 0 : index
    %c0_50 = arith.constant 0 : index
    %121 = vector.load %arg11[%c0_49, %c0_50] : memref<8x128xf32, #tpu.memory_space<vmem>>, vector<1x128xf32>
    tpu.vector_store %arg11[%c0_49, %c0_50], %120 {strides = array<i32>} : memref<8x128xf32, #tpu.memory_space<vmem>>, vector<1x128xf32>,
    %c3 = arith.constant 3 : index
    %c0_51 = arith.constant 0 : index
    %122 = vector.load %arg10[%c3, %c0_51] : memref<8x512xf32, #tpu.memory_space<vmem>>, vector<1x512xf32>
    %c0_52 = arith.constant 0 : index
    %c0_53 = arith.constant 0 : index
    %123 = vector.load %arg5[%c0_52, %c0_53] : memref<128x512xf32, #tpu.memory_space<vmem>>, vector<128x512xf32>
    %cst_54 = arith.constant dense<0.000000e+00> : vector<1x512xf32>
    %124 = tpu.matmul %120, %123, %cst_54 {dimension_numbers = #tpu.dot_dimension_numbers<[1], [0], [0], [1], [0, 0, 1, 1], [], []>} : vector<1x128xf32>, vector<128x512xf32>, vector<1x512xf32> -> vector<1x512xf32>
    %125 = arith.addf %122, %124 : vector<1x512xf32>
    %126 = math.tanh %125 : vector<1x512xf32>
    %127 = vector.extract_strided_slice %126 {offsets = [0, 0], sizes = [1, 128], strides = [1, 1]} : vector<1x512xf32> to vector<1x128xf32>
    %cst_55 = arith.constant 5.000000e-01 : f32
    %128 = vector.broadcast %cst_55 : f32 to vector<1x128xf32>
    %129 = arith.mulf %128, %127 : vector<1x128xf32>
    %cst_56 = arith.constant 5.000000e-01 : f32
    %130 = vector.broadcast %cst_56 : f32 to vector<1x128xf32>
    %131 = arith.addf %130, %129 : vector<1x128xf32>
    %132 = vector.extract_strided_slice %126 {offsets = [0, 128], sizes = [1, 128], strides = [1, 1]} : vector<1x512xf32> to vector<1x128xf32>
    %cst_57 = arith.constant 5.000000e-01 : f32
    %133 = vector.broadcast %cst_57 : f32 to vector<1x128xf32>
    %134 = arith.mulf %133, %132 : vector<1x128xf32>
    %cst_58 = arith.constant 5.000000e-01 : f32
    %135 = vector.broadcast %cst_58 : f32 to vector<1x128xf32>
    %136 = arith.addf %135, %134 : vector<1x128xf32>
    %137 = vector.extract_strided_slice %126 {offsets = [0, 256], sizes = [1, 128], strides = [1, 1]} : vector<1x512xf32> to vector<1x128xf32>
    %138 = vector.extract_strided_slice %126 {offsets = [0, 384], sizes = [1, 128], strides = [1, 1]} : vector<1x512xf32> to vector<1x128xf32>
    %cst_59 = arith.constant 5.000000e-01 : f32
    %139 = vector.broadcast %cst_59 : f32 to vector<1x128xf32>
    %140 = arith.mulf %139, %138 : vector<1x128xf32>
    %cst_60 = arith.constant 5.000000e-01 : f32
    %141 = vector.broadcast %cst_60 : f32 to vector<1x128xf32>
    %142 = arith.addf %141, %140 : vector<1x128xf32>
    %143 = arith.mulf %136, %118 : vector<1x128xf32>
    %144 = arith.mulf %131, %137 : vector<1x128xf32>
    %145 = arith.addf %143, %144 : vector<1x128xf32>
    %146 = math.tanh %145 : vector<1x128xf32>
    %147 = arith.mulf %142, %146 : vector<1x128xf32>
    %c1_61 = arith.constant 1 : index
    %c0_62 = arith.constant 0 : index
    %148 = vector.load %arg11[%c1_61, %c0_62] : memref<8x128xf32, #tpu.memory_space<vmem>>, vector<1x128xf32>
    tpu.vector_store %arg11[%c1_61, %c0_62], %147 {strides = array<i32>} : memref<8x128xf32, #tpu.memory_space<vmem>>, vector<1x128xf32>,
    %c4 = arith.constant 4 : index
    %c0_63 = arith.constant 0 : index
    %149 = vector.load %arg10[%c4, %c0_63] : memref<8x512xf32, #tpu.memory_space<vmem>>, vector<1x512xf32>
    %c0_64 = arith.constant 0 : index
    %c0_65 = arith.constant 0 : index
    %150 = vector.load %arg5[%c0_64, %c0_65] : memref<128x512xf32, #tpu.memory_space<vmem>>, vector<128x512xf32>
    %cst_66 = arith.constant dense<0.000000e+00> : vector<1x512xf32>
    %151 = tpu.matmul %147, %150, %cst_66 {dimension_numbers = #tpu.dot_dimension_numbers<[1], [0], [0], [1], [0, 0, 1, 1], [], []>} : vector<1x128xf32>, vector<128x512xf32>, vector<1x512xf32> -> vector<1x512xf32>
    %152 = arith.addf %149, %151 : vector<1x512xf32>
    %153 = math.tanh %152 : vector<1x512xf32>
    %154 = vector.extract_strided_slice %153 {offsets = [0, 0], sizes = [1, 128], strides = [1, 1]} : vector<1x512xf32> to vector<1x128xf32>
    %cst_67 = arith.constant 5.000000e-01 : f32
    %155 = vector.broadcast %cst_67 : f32 to vector<1x128xf32>
    %156 = arith.mulf %155, %154 : vector<1x128xf32>
    %cst_68 = arith.constant 5.000000e-01 : f32
    %157 = vector.broadcast %cst_68 : f32 to vector<1x128xf32>
    %158 = arith.addf %157, %156 : vector<1x128xf32>
    %159 = vector.extract_strided_slice %153 {offsets = [0, 128], sizes = [1, 128], strides = [1, 1]} : vector<1x512xf32> to vector<1x128xf32>
    %cst_69 = arith.constant 5.000000e-01 : f32
    %160 = vector.broadcast %cst_69 : f32 to vector<1x128xf32>
    %161 = arith.mulf %160, %159 : vector<1x128xf32>
    %cst_70 = arith.constant 5.000000e-01 : f32
    %162 = vector.broadcast %cst_70 : f32 to vector<1x128xf32>
    %163 = arith.addf %162, %161 : vector<1x128xf32>
    %164 = vector.extract_strided_slice %153 {offsets = [0, 256], sizes = [1, 128], strides = [1, 1]} : vector<1x512xf32> to vector<1x128xf32>
    %165 = vector.extract_strided_slice %153 {offsets = [0, 384], sizes = [1, 128], strides = [1, 1]} : vector<1x512xf32> to vector<1x128xf32>
    %cst_71 = arith.constant 5.000000e-01 : f32
    %166 = vector.broadcast %cst_71 : f32 to vector<1x128xf32>
    %167 = arith.mulf %166, %165 : vector<1x128xf32>
    %cst_72 = arith.constant 5.000000e-01 : f32
    %168 = vector.broadcast %cst_72 : f32 to vector<1x128xf32>
    %169 = arith.addf %168, %167 : vector<1x128xf32>
    %170 = arith.mulf %163, %145 : vector<1x128xf32>
    %171 = arith.mulf %158, %164 : vector<1x128xf32>
    %172 = arith.addf %170, %171 : vector<1x128xf32>
    %173 = math.tanh %172 : vector<1x128xf32>
    %174 = arith.mulf %169, %173 : vector<1x128xf32>
    %c2_73 = arith.constant 2 : index
    %c0_74 = arith.constant 0 : index
    %175 = vector.load %arg11[%c2_73, %c0_74] : memref<8x128xf32, #tpu.memory_space<vmem>>, vector<1x128xf32>
    tpu.vector_store %arg11[%c2_73, %c0_74], %174 {strides = array<i32>} : memref<8x128xf32, #tpu.memory_space<vmem>>, vector<1x128xf32>,
    %c5 = arith.constant 5 : index
    %c0_75 = arith.constant 0 : index
    %176 = vector.load %arg10[%c5, %c0_75] : memref<8x512xf32, #tpu.memory_space<vmem>>, vector<1x512xf32>
    %c0_76 = arith.constant 0 : index
    %c0_77 = arith.constant 0 : index
    %177 = vector.load %arg5[%c0_76, %c0_77] : memref<128x512xf32, #tpu.memory_space<vmem>>, vector<128x512xf32>
    %cst_78 = arith.constant dense<0.000000e+00> : vector<1x512xf32>
    %178 = tpu.matmul %174, %177, %cst_78 {dimension_numbers = #tpu.dot_dimension_numbers<[1], [0], [0], [1], [0, 0, 1, 1], [], []>} : vector<1x128xf32>, vector<128x512xf32>, vector<1x512xf32> -> vector<1x512xf32>
    %179 = arith.addf %176, %178 : vector<1x512xf32>
    %180 = math.tanh %179 : vector<1x512xf32>
    %181 = vector.extract_strided_slice %180 {offsets = [0, 0], sizes = [1, 128], strides = [1, 1]} : vector<1x512xf32> to vector<1x128xf32>
    %cst_79 = arith.constant 5.000000e-01 : f32
    %182 = vector.broadcast %cst_79 : f32 to vector<1x128xf32>
    %183 = arith.mulf %182, %181 : vector<1x128xf32>
    %cst_80 = arith.constant 5.000000e-01 : f32
    %184 = vector.broadcast %cst_80 : f32 to vector<1x128xf32>
    %185 = arith.addf %184, %183 : vector<1x128xf32>
    %186 = vector.extract_strided_slice %180 {offsets = [0, 128], sizes = [1, 128], strides = [1, 1]} : vector<1x512xf32> to vector<1x128xf32>
    %cst_81 = arith.constant 5.000000e-01 : f32
    %187 = vector.broadcast %cst_81 : f32 to vector<1x128xf32>
    %188 = arith.mulf %187, %186 : vector<1x128xf32>
    %cst_82 = arith.constant 5.000000e-01 : f32
    %189 = vector.broadcast %cst_82 : f32 to vector<1x128xf32>
    %190 = arith.addf %189, %188 : vector<1x128xf32>
    %191 = vector.extract_strided_slice %180 {offsets = [0, 256], sizes = [1, 128], strides = [1, 1]} : vector<1x512xf32> to vector<1x128xf32>
    %192 = vector.extract_strided_slice %180 {offsets = [0, 384], sizes = [1, 128], strides = [1, 1]} : vector<1x512xf32> to vector<1x128xf32>
    %cst_83 = arith.constant 5.000000e-01 : f32
    %193 = vector.broadcast %cst_83 : f32 to vector<1x128xf32>
    %194 = arith.mulf %193, %192 : vector<1x128xf32>
    %cst_84 = arith.constant 5.000000e-01 : f32
    %195 = vector.broadcast %cst_84 : f32 to vector<1x128xf32>
    %196 = arith.addf %195, %194 : vector<1x128xf32>
    %197 = arith.mulf %190, %172 : vector<1x128xf32>
    %198 = arith.mulf %185, %191 : vector<1x128xf32>
    %199 = arith.addf %197, %198 : vector<1x128xf32>
    %200 = math.tanh %199 : vector<1x128xf32>
    %201 = arith.mulf %196, %200 : vector<1x128xf32>
    %c3_85 = arith.constant 3 : index
    %c0_86 = arith.constant 0 : index
    %202 = vector.load %arg11[%c3_85, %c0_86] : memref<8x128xf32, #tpu.memory_space<vmem>>, vector<1x128xf32>
    tpu.vector_store %arg11[%c3_85, %c0_86], %201 {strides = array<i32>} : memref<8x128xf32, #tpu.memory_space<vmem>>, vector<1x128xf32>,
    %c6 = arith.constant 6 : index
    %c0_87 = arith.constant 0 : index
    %203 = vector.load %arg10[%c6, %c0_87] : memref<8x512xf32, #tpu.memory_space<vmem>>, vector<1x512xf32>
    %c0_88 = arith.constant 0 : index
    %c0_89 = arith.constant 0 : index
    %204 = vector.load %arg5[%c0_88, %c0_89] : memref<128x512xf32, #tpu.memory_space<vmem>>, vector<128x512xf32>
    %cst_90 = arith.constant dense<0.000000e+00> : vector<1x512xf32>
    %205 = tpu.matmul %201, %204, %cst_90 {dimension_numbers = #tpu.dot_dimension_numbers<[1], [0], [0], [1], [0, 0, 1, 1], [], []>} : vector<1x128xf32>, vector<128x512xf32>, vector<1x512xf32> -> vector<1x512xf32>
    %206 = arith.addf %203, %205 : vector<1x512xf32>
    %207 = math.tanh %206 : vector<1x512xf32>
    %208 = vector.extract_strided_slice %207 {offsets = [0, 0], sizes = [1, 128], strides = [1, 1]} : vector<1x512xf32> to vector<1x128xf32>
    %cst_91 = arith.constant 5.000000e-01 : f32
    %209 = vector.broadcast %cst_91 : f32 to vector<1x128xf32>
    %210 = arith.mulf %209, %208 : vector<1x128xf32>
    %cst_92 = arith.constant 5.000000e-01 : f32
    %211 = vector.broadcast %cst_92 : f32 to vector<1x128xf32>
    %212 = arith.addf %211, %210 : vector<1x128xf32>
    %213 = vector.extract_strided_slice %207 {offsets = [0, 128], sizes = [1, 128], strides = [1, 1]} : vector<1x512xf32> to vector<1x128xf32>
    %cst_93 = arith.constant 5.000000e-01 : f32
    %214 = vector.broadcast %cst_93 : f32 to vector<1x128xf32>
    %215 = arith.mulf %214, %213 : vector<1x128xf32>
    %cst_94 = arith.constant 5.000000e-01 : f32
    %216 = vector.broadcast %cst_94 : f32 to vector<1x128xf32>
    %217 = arith.addf %216, %215 : vector<1x128xf32>
    %218 = vector.extract_strided_slice %207 {offsets = [0, 256], sizes = [1, 128], strides = [1, 1]} : vector<1x512xf32> to vector<1x128xf32>
    %219 = vector.extract_strided_slice %207 {offsets = [0, 384], sizes = [1, 128], strides = [1, 1]} : vector<1x512xf32> to vector<1x128xf32>
    %cst_95 = arith.constant 5.000000e-01 : f32
    %220 = vector.broadcast %cst_95 : f32 to vector<1x128xf32>
    %221 = arith.mulf %220, %219 : vector<1x128xf32>
    %cst_96 = arith.constant 5.000000e-01 : f32
    %222 = vector.broadcast %cst_96 : f32 to vector<1x128xf32>
    %223 = arith.addf %222, %221 : vector<1x128xf32>
    %224 = arith.mulf %217, %199 : vector<1x128xf32>
    %225 = arith.mulf %212, %218 : vector<1x128xf32>
    %226 = arith.addf %224, %225 : vector<1x128xf32>
    %227 = math.tanh %226 : vector<1x128xf32>
    %228 = arith.mulf %223, %227 : vector<1x128xf32>
    %c4_97 = arith.constant 4 : index
    %c0_98 = arith.constant 0 : index
    %229 = vector.load %arg11[%c4_97, %c0_98] : memref<8x128xf32, #tpu.memory_space<vmem>>, vector<1x128xf32>
    tpu.vector_store %arg11[%c4_97, %c0_98], %228 {strides = array<i32>} : memref<8x128xf32, #tpu.memory_space<vmem>>, vector<1x128xf32>,
    %c7 = arith.constant 7 : index
    %c0_99 = arith.constant 0 : index
    %230 = vector.load %arg10[%c7, %c0_99] : memref<8x512xf32, #tpu.memory_space<vmem>>, vector<1x512xf32>
    %c0_100 = arith.constant 0 : index
    %c0_101 = arith.constant 0 : index
    %231 = vector.load %arg5[%c0_100, %c0_101] : memref<128x512xf32, #tpu.memory_space<vmem>>, vector<128x512xf32>
    %cst_102 = arith.constant dense<0.000000e+00> : vector<1x512xf32>
    %232 = tpu.matmul %228, %231, %cst_102 {dimension_numbers = #tpu.dot_dimension_numbers<[1], [0], [0], [1], [0, 0, 1, 1], [], []>} : vector<1x128xf32>, vector<128x512xf32>, vector<1x512xf32> -> vector<1x512xf32>
    %233 = arith.addf %230, %232 : vector<1x512xf32>
    %234 = math.tanh %233 : vector<1x512xf32>
    %235 = vector.extract_strided_slice %234 {offsets = [0, 0], sizes = [1, 128], strides = [1, 1]} : vector<1x512xf32> to vector<1x128xf32>
    %cst_103 = arith.constant 5.000000e-01 : f32
    %236 = vector.broadcast %cst_103 : f32 to vector<1x128xf32>
    %237 = arith.mulf %236, %235 : vector<1x128xf32>
    %cst_104 = arith.constant 5.000000e-01 : f32
    %238 = vector.broadcast %cst_104 : f32 to vector<1x128xf32>
    %239 = arith.addf %238, %237 : vector<1x128xf32>
    %240 = vector.extract_strided_slice %234 {offsets = [0, 128], sizes = [1, 128], strides = [1, 1]} : vector<1x512xf32> to vector<1x128xf32>
    %cst_105 = arith.constant 5.000000e-01 : f32
    %241 = vector.broadcast %cst_105 : f32 to vector<1x128xf32>
    %242 = arith.mulf %241, %240 : vector<1x128xf32>
    %cst_106 = arith.constant 5.000000e-01 : f32
    %243 = vector.broadcast %cst_106 : f32 to vector<1x128xf32>
    %244 = arith.addf %243, %242 : vector<1x128xf32>
    %245 = vector.extract_strided_slice %234 {offsets = [0, 256], sizes = [1, 128], strides = [1, 1]} : vector<1x512xf32> to vector<1x128xf32>
    %246 = vector.extract_strided_slice %234 {offsets = [0, 384], sizes = [1, 128], strides = [1, 1]} : vector<1x512xf32> to vector<1x128xf32>
    %cst_107 = arith.constant 5.000000e-01 : f32
    %247 = vector.broadcast %cst_107 : f32 to vector<1x128xf32>
    %248 = arith.mulf %247, %246 : vector<1x128xf32>
    %cst_108 = arith.constant 5.000000e-01 : f32
    %249 = vector.broadcast %cst_108 : f32 to vector<1x128xf32>
    %250 = arith.addf %249, %248 : vector<1x128xf32>
    %251 = arith.mulf %244, %226 : vector<1x128xf32>
    %252 = arith.mulf %239, %245 : vector<1x128xf32>
    %253 = arith.addf %251, %252 : vector<1x128xf32>
    %254 = math.tanh %253 : vector<1x128xf32>
    %255 = arith.mulf %250, %254 : vector<1x128xf32>
    %c5_109 = arith.constant 5 : index
    %c0_110 = arith.constant 0 : index
    %256 = vector.load %arg11[%c5_109, %c0_110] : memref<8x128xf32, #tpu.memory_space<vmem>>, vector<1x128xf32>
    tpu.vector_store %arg11[%c5_109, %c0_110], %255 {strides = array<i32>} : memref<8x128xf32, #tpu.memory_space<vmem>>, vector<1x128xf32>,
    %c7_111 = arith.constant 7 : index
    %c0_112 = arith.constant 0 : index
    %257 = vector.load %arg10[%c7_111, %c0_112] : memref<8x512xf32, #tpu.memory_space<vmem>>, vector<1x512xf32>
    %c0_113 = arith.constant 0 : index
    %c0_114 = arith.constant 0 : index
    %258 = vector.load %arg5[%c0_113, %c0_114] : memref<128x512xf32, #tpu.memory_space<vmem>>, vector<128x512xf32>
    %cst_115 = arith.constant dense<0.000000e+00> : vector<1x512xf32>
    %259 = tpu.matmul %255, %258, %cst_115 {dimension_numbers = #tpu.dot_dimension_numbers<[1], [0], [0], [1], [0, 0, 1, 1], [], []>} : vector<1x128xf32>, vector<128x512xf32>, vector<1x512xf32> -> vector<1x512xf32>
    %260 = arith.addf %257, %259 : vector<1x512xf32>
    %261 = math.tanh %260 : vector<1x512xf32>
    %262 = vector.extract_strided_slice %261 {offsets = [0, 0], sizes = [1, 128], strides = [1, 1]} : vector<1x512xf32> to vector<1x128xf32>
    %cst_116 = arith.constant 5.000000e-01 : f32
    %263 = vector.broadcast %cst_116 : f32 to vector<1x128xf32>
    %264 = arith.mulf %263, %262 : vector<1x128xf32>
    %cst_117 = arith.constant 5.000000e-01 : f32
    %265 = vector.broadcast %cst_117 : f32 to vector<1x128xf32>
    %266 = arith.addf %265, %264 : vector<1x128xf32>
    %267 = vector.extract_strided_slice %261 {offsets = [0, 128], sizes = [1, 128], strides = [1, 1]} : vector<1x512xf32> to vector<1x128xf32>
    %cst_118 = arith.constant 5.000000e-01 : f32
    %268 = vector.broadcast %cst_118 : f32 to vector<1x128xf32>
    %269 = arith.mulf %268, %267 : vector<1x128xf32>
    %cst_119 = arith.constant 5.000000e-01 : f32
    %270 = vector.broadcast %cst_119 : f32 to vector<1x128xf32>
    %271 = arith.addf %270, %269 : vector<1x128xf32>
    %272 = vector.extract_strided_slice %261 {offsets = [0, 256], sizes = [1, 128], strides = [1, 1]} : vector<1x512xf32> to vector<1x128xf32>
    %273 = vector.extract_strided_slice %261 {offsets = [0, 384], sizes = [1, 128], strides = [1, 1]} : vector<1x512xf32> to vector<1x128xf32>
    %cst_120 = arith.constant 5.000000e-01 : f32
    %274 = vector.broadcast %cst_120 : f32 to vector<1x128xf32>
    %275 = arith.mulf %274, %273 : vector<1x128xf32>
    %cst_121 = arith.constant 5.000000e-01 : f32
    %276 = vector.broadcast %cst_121 : f32 to vector<1x128xf32>
    %277 = arith.addf %276, %275 : vector<1x128xf32>
    %278 = arith.mulf %271, %253 : vector<1x128xf32>
    %279 = arith.mulf %266, %272 : vector<1x128xf32>
    %280 = arith.addf %278, %279 : vector<1x128xf32>
    %281 = math.tanh %280 : vector<1x128xf32>
    %282 = arith.mulf %277, %281 : vector<1x128xf32>
    %283 = arith.select %31, %282, %255 : vector<1x128xi1>, vector<1x128xf32>
    %284 = arith.select %31, %280, %253 : vector<1x128xi1>, vector<1x128xf32>
    %c6_122 = arith.constant 6 : index
    %c0_123 = arith.constant 0 : index
    %285 = vector.load %arg11[%c6_122, %c0_123] : memref<8x128xf32, #tpu.memory_space<vmem>>, vector<1x128xf32>
    tpu.vector_store %arg11[%c6_122, %c0_123], %282 {strides = array<i32>} : memref<8x128xf32, #tpu.memory_space<vmem>>, vector<1x128xf32>,
    %c7_124 = arith.constant 7 : index
    %c0_125 = arith.constant 0 : index
    %286 = vector.load %arg10[%c7_124, %c0_125] : memref<8x512xf32, #tpu.memory_space<vmem>>, vector<1x512xf32>
    %c0_126 = arith.constant 0 : index
    %c0_127 = arith.constant 0 : index
    %287 = vector.load %arg5[%c0_126, %c0_127] : memref<128x512xf32, #tpu.memory_space<vmem>>, vector<128x512xf32>
    %cst_128 = arith.constant dense<0.000000e+00> : vector<1x512xf32>
    %288 = tpu.matmul %283, %287, %cst_128 {dimension_numbers = #tpu.dot_dimension_numbers<[1], [0], [0], [1], [0, 0, 1, 1], [], []>} : vector<1x128xf32>, vector<128x512xf32>, vector<1x512xf32> -> vector<1x512xf32>
    %289 = arith.addf %286, %288 : vector<1x512xf32>
    %290 = math.tanh %289 : vector<1x512xf32>
    %291 = vector.extract_strided_slice %290 {offsets = [0, 0], sizes = [1, 128], strides = [1, 1]} : vector<1x512xf32> to vector<1x128xf32>
    %cst_129 = arith.constant 5.000000e-01 : f32
    %292 = vector.broadcast %cst_129 : f32 to vector<1x128xf32>
    %293 = arith.mulf %292, %291 : vector<1x128xf32>
    %cst_130 = arith.constant 5.000000e-01 : f32
    %294 = vector.broadcast %cst_130 : f32 to vector<1x128xf32>
    %295 = arith.addf %294, %293 : vector<1x128xf32>
    %296 = vector.extract_strided_slice %290 {offsets = [0, 128], sizes = [1, 128], strides = [1, 1]} : vector<1x512xf32> to vector<1x128xf32>
    %cst_131 = arith.constant 5.000000e-01 : f32
    %297 = vector.broadcast %cst_131 : f32 to vector<1x128xf32>
    %298 = arith.mulf %297, %296 : vector<1x128xf32>
    %cst_132 = arith.constant 5.000000e-01 : f32
    %299 = vector.broadcast %cst_132 : f32 to vector<1x128xf32>
    %300 = arith.addf %299, %298 : vector<1x128xf32>
    %301 = vector.extract_strided_slice %290 {offsets = [0, 256], sizes = [1, 128], strides = [1, 1]} : vector<1x512xf32> to vector<1x128xf32>
    %302 = vector.extract_strided_slice %290 {offsets = [0, 384], sizes = [1, 128], strides = [1, 1]} : vector<1x512xf32> to vector<1x128xf32>
    %cst_133 = arith.constant 5.000000e-01 : f32
    %303 = vector.broadcast %cst_133 : f32 to vector<1x128xf32>
    %304 = arith.mulf %303, %302 : vector<1x128xf32>
    %cst_134 = arith.constant 5.000000e-01 : f32
    %305 = vector.broadcast %cst_134 : f32 to vector<1x128xf32>
    %306 = arith.addf %305, %304 : vector<1x128xf32>
    %307 = arith.mulf %300, %284 : vector<1x128xf32>
    %308 = arith.mulf %295, %301 : vector<1x128xf32>
    %309 = arith.addf %307, %308 : vector<1x128xf32>
    %310 = math.tanh %309 : vector<1x128xf32>
    %311 = arith.mulf %306, %310 : vector<1x128xf32>
    %312 = arith.select %36, %311, %283 : vector<1x128xi1>, vector<1x128xf32>
    %313 = arith.select %36, %309, %284 : vector<1x128xi1>, vector<1x128xf32>
    %c7_135 = arith.constant 7 : index
    %c0_136 = arith.constant 0 : index
    %314 = vector.load %arg11[%c7_135, %c0_136] : memref<8x128xf32, #tpu.memory_space<vmem>>, vector<1x128xf32>
    tpu.vector_store %arg11[%c7_135, %c0_136], %311 {strides = array<i32>} : memref<8x128xf32, #tpu.memory_space<vmem>>, vector<1x128xf32>,
    %c0_137 = arith.constant 0 : index
    %c0_138 = arith.constant 0 : index
    %315 = vector.load %arg11[%c0_137, %c0_138] : memref<8x128xf32, #tpu.memory_space<vmem>>, vector<8x128xf32>
    %c0_139 = arith.constant 0 : index
    %c0_140 = arith.constant 0 : index
    %316 = vector.load %arg6[%c0_139, %c0_140] : memref<128x128xf32, #tpu.memory_space<vmem>>, vector<128x128xf32>
    %cst_141 = arith.constant dense<0.000000e+00> : vector<8x128xf32>
    %317 = tpu.matmul %315, %316, %cst_141 {dimension_numbers = #tpu.dot_dimension_numbers<[1], [0], [0], [1], [0, 0, 1, 1], [], []>} : vector<8x128xf32>, vector<128x128xf32>, vector<8x128xf32> -> vector<8x128xf32>
    %c0_142 = arith.constant 0 : index
    %c0_143 = arith.constant 0 : index
    %318 = vector.load %arg7[%c0_142, %c0_143] : memref<1x128xf32, #tpu.memory_space<vmem>>, vector<1x128xf32>
    %319 = vector.broadcast %318 : vector<1x128xf32> to vector<8x128xf32>
    %320 = arith.addf %317, %319 : vector<8x128xf32>
    %c0_144 = arith.constant 0 : index
    %c0_145 = arith.constant 0 : index
    %321 = vector.load %arg8[%c0_144, %c0_145] : memref<8x128xf32, #tpu.memory_space<vmem>>, vector<8x128xf32>
    tpu.vector_store %arg8[%c0_144, %c0_145], %320 {strides = array<i32>} : memref<8x128xf32, #tpu.memory_space<vmem>>, vector<8x128xf32>,
    %c0_146 = arith.constant 0 : index
    %c0_147 = arith.constant 0 : index
    %322 = vector.load %arg9[%c0_146, %c0_147] : memref<2x128xf32, #tpu.memory_space<vmem>>, vector<1x128xf32>
    tpu.vector_store %arg9[%c0_146, %c0_147], %312 {strides = array<i32>} : memref<2x128xf32, #tpu.memory_space<vmem>>, vector<1x128xf32>,
    %c1_148 = arith.constant 1 : index
    %c0_149 = arith.constant 0 : index
    %323 = vector.load %arg9[%c1_148, %c0_149] : memref<2x128xf32, #tpu.memory_space<vmem>>, vector<1x128xf32>
    tpu.vector_store %arg9[%c1_148, %c0_149], %313 {strides = array<i32>} : memref<2x128xf32, #tpu.memory_space<vmem>>, vector<1x128xf32>,
    return
  }
}

</mosaic_0001>

<bundles_post_ra>
// kernel: squeeze.3
= control target key start
LH: loop header
LB: loop body
LE: loop exit
PB: predicated region body
PF: predicated region fallthrough
CT: control target
= control target key end

     0   :  { %s88_s0 = inlined_call_operand.vmem [shape: f32[96], index: 0, kind: input, shape index: {}]   ;;  %s89_s1 = inlined_call_operand.hbm [shape: f32[3,32], index: 1, kind: output, shape index: {}]  }
   0x1   :  { %v5_v0 = vld [vmem:[%s88_s0] sm:$0x1] }
   0x2   :  { %6 = vst [vmem:[#allocation3] sm:$0x1] %v5_v0 }
   0x3   :  { %2 = vsyncpa [#allocation1], 0  ;;  %s69_s0 = smov 96   ;;  %s70_s8 = smov 64   ;;  %vm8_vm0 = vcmask 261120  }
   0x4   :  { %s71_s9 = smov [#allocation0]   ;;  %s33_s1 = sshll.u32 %s89_s1, 4  ;;  %s34_s1 = int_to_ptr.hbm [resolvable:$true] %s33_s1 }
   0x5   :  { %s31_s10 = sshll.u32 %s71_s9, 4  ;;  %s32_s10 = int_to_ptr.vmem [resolvable:$true] %s31_s10 }
   0x9   :  { %v10_v1 = vld [vmem:[#allocation3] sm:$0x1]  }
   0xa   :  { %11 = vrot.lane.b32.xlu0 %v10_v1, %s69_s0  ;;  %v16_v2 = vld [vmem:[#allocation3] sm:$0x1]  }
   0xb   :  { %v7_v3 = vld [vmem:[#allocation3] sm:$0x1]  }
   0xc   :  { %9 = vst.msk [vmem:[#allocation2] sm:$0x1] %vm8_vm0, %v7_v3  }
  0x12   :  { %17 = vrot.lane.b32.xlu0 %v16_v2, %s70_s8 }
  0x7c   :  { %v12_v4 = vpop.permute.xlu0 %11  }
  0x7d   :  { %15 = vst.msk [vmem:[#allocation2 + $0x1] sm:$0x1] %vm8_vm0, %v12_v4  }
  0x84   :  { %v18_v5 = vpop.permute.xlu0 %17  }
  0x85   :  { %21 = vst.msk [vmem:[#allocation2 + $0x2] sm:$0x1] %vm8_vm0, %v18_v5  }
  0x8c   :  { %v24_v6 = vld [vmem:[#allocation2] sm:$0xf] }
  0x8d   :  { %27 = vst [vmem:[#allocation0] sm:$0xf] %v24_v6 }
  0x8e   :  { %36 = dma.vmem_to_hbm [thread:$0]  %s32_s10, 64, %s34_s1, [#allocation1]  }
  0x8f   :  { %67 = dma.done.wait [#allocation1], 64  }
  0x90   :  { %68 = vsyncadd [#allocation1], 4294967232 }
  0x91   :  { %39 = vsyncpa [#allocation1], 1 }

// kernel: decoder_forward.1
= control target key start
LH: loop header
LB: loop body
LE: loop exit
PB: predicated region body
PF: predicated region fallthrough
CT: control target
= control target key end

     0   :  { %15 = vsyncpa [#allocation5], 0  ;;  %s3494_s0 = inlined_call_operand.vmem [shape: s32[8,1], index: 0, kind: input, shape index: {}]   ;;  %s3495_s1 = inlined_call_operand.hbm [shape: f32[64,512], index: 1, kind: input, shape index: {}]   ;;  %s3496_s2 = inlined_call_operand.vmem [shape: f32[8,32], index: 2, kind: input, shape index: {}]   ;;  %s3497_s3 = inlined_call_operand.hbm [shape: f32[32,512], index: 3, kind: input, shape index: {}]   ;;  %s3498_s4 = inlined_call_operand.hbm [shape: f32[1,512], index: 4, kind: input, shape index: {}]   ;;  %s3499_s5 = inlined_call_operand.hbm [shape: f32[128,512], index: 5, kind: input, shape index: {}]   ;;  %s3500_s6 = inlined_call_operand.hbm [shape: f32[128,128], index: 6, kind: input, shape index: {}]   ;;  %s3501_s7 = inlined_call_operand.vmem [shape: f32[1,128], index: 7, kind: input, shape index: {}]   ;;  %s3502_s8 = inlined_call_operand.hbm [shape: f32[8,128], index: 8, kind: output, shape index: {0}]   ;;  %s3503_s9 = inlined_call_operand.vmem [shape: f32[2,128], index: 9, kind: output, shape index: {1}]  }
   0x1   :  { %16 = vsyncpa [#allocation8], 0 }
   0x2   :  { %17 = vsyncpa [#allocation11], 0 }
   0x3   :  { %18 = vsyncpa [#allocation6], 0  ;;  %s40_s11 = sshll.u32 %s3497_s3, 4  ;;  %s2306_s12 = smov [#allocation7]   ;;  %s41_s11 = int_to_ptr.hbm [resolvable:$true] %s40_s11 }
   0x4   :  { %s42_s13 = sshll.u32 %s2306_s12, 4  ;;  %s64_s16 = sshll.u32 %s3499_s5, 4  ;;  %s43_s13 = int_to_ptr.vmem [resolvable:$true] %s42_s13  ;;  %s65_s16 = int_to_ptr.hbm [resolvable:$true] %s64_s16 }
   0x5   :  { %s2307_s17 = smov 512   ;;  %s2308_s18 = smov 32  }
   0x6   :  { %48 = dma.hbm_to_vmem [thread:$0]  %s41_s11, 2048, %s43_s13, [#allocation8], %s2307_s17, %s2307_s17, %s2308_s18  }
   0x7   :  { %s2309_s19 = smov [#allocation10]   ;;  %s25_s23 = sshll.u32 %s3495_s1, 4  ;;  %s26_s23 = int_to_ptr.hbm [resolvable:$true] %s25_s23 }
   0x8   :  { %s66_s20 = sshll.u32 %s2309_s19, 4  ;;  %s54_s25 = sshll.u32 %s3498_s4, 4  ;;  %s67_s20 = int_to_ptr.vmem [resolvable:$true] %s66_s20  ;;  %s55_s25 = int_to_ptr.hbm [resolvable:$true] %s54_s25 }
   0x9   :  { %72 = dma.hbm_to_vmem [thread:$0]  %s65_s16, 8192, %s67_s20, [#allocation11], %s2307_s17, %s2307_s17, %s2308_s18  }
   0xa   :  { %s2310_s26 = smov [#allocation4]   ;;  %s2311_s5 = smov [#allocation9]  }
   0xb   :  { %s27_s27 = sshll.u32 %s2310_s26, 4  ;;  %s56_s28 = sshll.u32 %s2311_s5, 4  ;;  %s28_s27 = int_to_ptr.vmem [resolvable:$true] %s27_s27  ;;  %s57_s28 = int_to_ptr.vmem [resolvable:$true] %s56_s28 }
   0xc   :  { %33 = dma.hbm_to_vmem [thread:$0]  %s26_s23, 4096, %s28_s27, [#allocation5], %s2307_s17, %s2307_s17, %s2308_s18  }
   0xd   :  { %s77_s10 = sshll.u32 %s3500_s6, 4  ;;  %s2312_s1 = smov [#allocation12]   ;;  %s78_s10 = int_to_ptr.hbm [resolvable:$true] %s77_s10 }
   0xe   :  { %59 = dma.hbm_to_vmem [thread:$0]  %s55_s25, 64, %s57_s28, [#allocation8]  }
   0xf   :  { %s79_s11 = sshll.u32 %s2312_s1, 4  ;;  %s2313_s12 = smov 128   ;;  %s80_s11 = int_to_ptr.vmem [resolvable:$true] %s79_s11 }
  0x10   :  { %s2314_s13 = smov 8  }
  0x11   :  { %85 = dma.hbm_to_vmem [thread:$0]  %s78_s10, 2048, %s80_s11, [#allocation11], %s2313_s12, %s2313_s12, %s2314_s13  }
  0x12   :  { %2298 = dma.done.wait [#allocation5], 4096  }
  0x13   :  { %2299 = vsyncadd [#allocation5], 4294963200 }
  0x14   :  { %2300 = dma.done.wait [#allocation8], 2112  }
  0x15   :  { %2301 = vsyncadd [#allocation8], 4294965184 }
  0x16   :  { %2302 = dma.done.wait [#allocation11], 10240  }
  0x17   :  { %2303 = vsyncadd [#allocation11], 4294957056  ;;  %v2315_v0 = vmov 0   ;;  %v108_v1 = vld [vmem:[%s3494_s0] sm:$0xff]  ;;  %v162_v2 = vld [vmem:[#allocation7 + $0x60] sm:$0xff]  ;;  %vm166_vm0 = vcmask 261120  }
  0x18   :  { %2112 = vset.pattern.permute.xlu0 %v2315_v0  ;;  %v163_v3 = vld [vmem:[#allocation7 + $0x68] sm:$0xff]  ;;  %182 = vmatpush.msra.mxu2 %v162_v2  ;;  %v158_v4 = vld [vmem:[#allocation7 + $0x40] sm:$0xff]  ;;  %v164_v12 = vld [vmem:[#allocation7 + $0x70] sm:$0xff]  ;;  %vm250_vm1 = vcmask 523264   ;;  %vm516_vm3 = vcmask 1042434   ;;  %vm514_vm4 = vcmask 1040384  }
  0x19   :  { %112 = vperm.xlu0 %2112, %v108_v1   ;;  %v159_v5 = vld [vmem:[#allocation7 + $0x48] sm:$0xff]  ;;  %202 = vmatpush.msra.mxu3 %v163_v3  ;;  %v154_v6 = vld [vmem:[#allocation7 + $0x20] sm:$0xff]  ;;  %v165_v14 = vld [vmem:[#allocation7 + $0x78] sm:$0xff]  ;;  %vm518_vm5 = vcmask 1041408   ;;  %s2317_s20 = smov [#allocation13]   ;;  %s2071_s3 = sshll.u32 %s3502_s8, 4  ;;  %s2072_s3 = int_to_ptr.hbm [resolvable:$true] %s2071_s3 }
  0x1a   :  { %v145_v7 = vld [vmem:[#allocation4 + $0xe0] sm:$0xff]  ;;  %183 = vmatpush.msra.mxu2 %v158_v4  ;;  %v155_v8 = vld [vmem:[#allocation7 + $0x28] sm:$0xff]  ;;  %v160_v16 = vld [vmem:[#allocation7 + $0x50] sm:$0xff]  ;;  %s2069_s21 = sshll.u32 %s2317_s20, 4  ;;  %s2070_s21 = int_to_ptr.vmem [resolvable:$true] %s2069_s21 }
  0x1b   :  { %262 = vmatpush.msra.mxu1 %v145_v7  ;;  %203 = vmatpush.msra.mxu3 %v159_v5  ;;  %v150_v9 = vld [vmem:[#allocation7] sm:$0xff]  ;;  %v151_v11 = vld [vmem:[#allocation7 + $0x8] sm:$0xff]  ;;  %v2389_v17 = vld [vmem:[%s3496_s2] sm:$0xff] }
  0x1c   :  { %v141_v10 = vld [vmem:[#allocation4 + $0xc0] sm:$0xff]  ;;  %184 = vmatpush.msra.mxu2 %v154_v6  ;;  %v161_v18 = vld [vmem:[#allocation7 + $0x58] sm:$0xff]  ;;  %v156_v20 = vld [vmem:[#allocation7 + $0x30] sm:$0xff] }
  0x1d   :  { %263 = vmatpush.msra.mxu1 %v141_v10  ;;  %v137_v13 = vld [vmem:[#allocation4 + $0xa0] sm:$0xff]  ;;  %204 = vmatpush.msra.mxu3 %v155_v8  ;;  %v157_v21 = vld [vmem:[#allocation7 + $0x38] sm:$0xff]  ;;  %v152_v22 = vld [vmem:[#allocation7 + $0x10] sm:$0xff] }
  0x1e   :  { %v133_v15 = vld [vmem:[#allocation4 + $0x80] sm:$0xff]  ;;  %185 = vmatpush.msra.mxu2 %v150_v9  ;;  %v153_v24 = vld [vmem:[#allocation7 + $0x18] sm:$0xff]  ;;  %v147_v25 = vld [vmem:[#allocation4 + $0xf0] sm:$0xff] }
  0x1f   :  { %264 = vmatpush.msra.mxu1 %v137_v13  ;;  %205 = vmatpush.msra.mxu3 %v151_v11  ;;  %v129_v19 = vld [vmem:[#allocation4 + $0x60] sm:$0xff]  ;;  %v148_v26 = vld [vmem:[#allocation4 + $0xf8] sm:$0xff]  ;;  %v143_v28 = vld [vmem:[#allocation4 + $0xd0] sm:$0xff] }
  0x20   :  { %222 = vmatpush.msrb.mxu2 %v164_v12  ;;  %2089 = vmatmul.msk.f32.vlgmr.msra.gmra.mxu3 %vm166_vm0, %v2389_v17  ;;  %v125_v23 = vld [vmem:[#allocation4 + $0x40] sm:$0xff]  ;;  %v144_v29 = vld [vmem:[#allocation4 + $0xd8] sm:$0xff]  ;;  %v139_v31 = vld [vmem:[#allocation4 + $0xb0] sm:$0xff] }
  0x21   :  { %242 = vmatpush.msrb.mxu3 %v165_v14  ;;  %265 = vmatpush.msra.mxu1 %v133_v15  ;;  %v121_v27 = vld [vmem:[#allocation4 + $0x20] sm:$0xff]  ;;  %v146_v32 = vld [vmem:[#allocation4 + $0xe8] sm:$0xff]  ;;  %v140_v33 = vld [vmem:[#allocation4 + $0xb8] sm:$0xff] }
  0x22   :  { %223 = vmatpush.msrb.mxu2 %v160_v16  ;;  %v117_v30 = vld [vmem:[#allocation4] sm:$0xff]  ;;  %v135_v34 = vld [vmem:[#allocation4 + $0x90] sm:$0xff]  ;;  %v142_v35 = vld [vmem:[#allocation4 + $0xc8] sm:$0xff] }
  0x23   :  { %243 = vmatpush.msrb.mxu3 %v161_v18  ;;  %266 = vmatpush.msra.mxu1 %v129_v19  ;;  %v136_v36 = vld [vmem:[#allocation4 + $0x98] sm:$0xff]  ;;  %v131_v37 = vld [vmem:[#allocation4 + $0x70] sm:$0xff]  ;;  %v138_v38 = vld [vmem:[#allocation4 + $0xa8] sm:$0xff] }
  0x24   :  { %224 = vmatpush.msrb.mxu2 %v156_v20  ;;  %v132_v39 = vld [vmem:[#allocation4 + $0x78] sm:$0xff]  ;;  %v127_v40 = vld [vmem:[#allocation4 + $0x50] sm:$0xff]  ;;  %v134_v41 = vld [vmem:[#allocation4 + $0x88] sm:$0xff] }
  0x25   :  { %244 = vmatpush.msrb.mxu3 %v157_v21  ;;  %2088 = vmatmul.msk.f32.vlgmr.msra.gmra.mxu2 %vm166_vm0, %v2389_v17  ;;  %v128_v42 = vld [vmem:[#allocation4 + $0x58] sm:$0xff]  ;;  %v123_v43 = vld [vmem:[#allocation4 + $0x30] sm:$0xff]  ;;  %v130_v45 = vld [vmem:[#allocation4 + $0x68] sm:$0xff] }
  0x26   :  { %225 = vmatpush.msrb.mxu2 %v152_v22  ;;  %267 = vmatpush.msra.mxu1 %v125_v23  ;;  %v124_v44 = vld [vmem:[#allocation4 + $0x38] sm:$0xff]  ;;  %v119_v46 = vld [vmem:[#allocation4 + $0x10] sm:$0xff]  ;;  %v126_v50 = vld [vmem:[#allocation4 + $0x48] sm:$0xff] }
  0x27   :  { %245 = vmatpush.msrb.mxu3 %v153_v24  ;;  %v120_v47 = vld [vmem:[#allocation4 + $0x18] sm:$0xff]  ;;  %v122_v53 = vld [vmem:[#allocation4 + $0x28] sm:$0xff] }
  0x28   :  { %302 = vmatpush.msra.mxu2 %v147_v25  ;;  %268 = vmatpush.msra.mxu1 %v121_v27  ;;  %v2399_v48 = vld [vmem:[#allocation10 + $0x1f0] sm:$0xff]  ;;  %v2401_v49 = vld [vmem:[#allocation10 + $0x1f8] sm:$0xff]  ;;  %v118_v56 = vld [vmem:[#allocation4 + $0x8] sm:$0xff] }
  0x29   :  { %322 = vmatpush.msra.mxu3 %v148_v26  ;;  %v2403_v51 = vld [vmem:[#allocation10 + $0x1d0] sm:$0xff]  ;;  %v2406_v52 = vld [vmem:[#allocation10 + $0x1d8] sm:$0xff]  ;;  %v2423_v59 = vld [vmem:[#allocation10 + $0x1e0] sm:$0xff]  ;;  %v109_v26 = vlaneseq }
  0x2a   :  { %303 = vmatpush.msra.mxu2 %v143_v28  ;;  %269 = vmatpush.msra.mxu1 %v117_v30  ;;  %v2411_v54 = vld [vmem:[#allocation10 + $0x1b0] sm:$0xff]  ;;  %v2413_v55 = vld [vmem:[#allocation10 + $0x1b8] sm:$0xff]  ;;  %v2432_v62 = vld [vmem:[#allocation10 + $0x1c0] sm:$0xff] }
  0x2b   :  { %323 = vmatpush.msra.mxu3 %v144_v29  ;;  %v2417_v57 = vld [vmem:[#allocation10 + $0x190] sm:$0xff]  ;;  %v2419_v58 = vld [vmem:[#allocation10 + $0x198] sm:$0xff]  ;;  %427 = vmatpush.msra.mxu0 %v2423_v59  ;;  %v2441_v1 = vld [vmem:[#allocation10 + $0x1a0] sm:$0xff] }
  0x2c   :  { %304 = vmatpush.msra.mxu2 %v139_v31  ;;  %282 = vmatpush.msrb.mxu1 %v146_v32  ;;  %v2426_v60 = vld [vmem:[#allocation10 + $0x170] sm:$0xff]  ;;  %v2428_v61 = vld [vmem:[#allocation10 + $0x178] sm:$0xff]  ;;  %v2450_v4 = vld [vmem:[#allocation10 + $0x180] sm:$0xff] }
  0x2d   :  { %324 = vmatpush.msra.mxu3 %v140_v33  ;;  %2090 = vmatmul.msk.f32.vlgmr.msrb.gmra.mxu2 %vm166_vm0, %v2389_v17  ;;  %v2435_v63 = vld [vmem:[#allocation10 + $0x150] sm:$0xff]  ;;  %v2437_v0 = vld [vmem:[#allocation10 + $0x158] sm:$0xff]  ;;  %v2458_v7 = vld [vmem:[#allocation10 + $0x160] sm:$0xff]  ;;  %v2532_v33 = vand.u32 127, %v109_v26 }
  0x2e   :  { %305 = vmatpush.msra.mxu2 %v135_v34  ;;  %283 = vmatpush.msrb.mxu1 %v142_v35  ;;  %v2444_v2 = vld [vmem:[#allocation10 + $0x130] sm:$0xff]  ;;  %v2446_v3 = vld [vmem:[#allocation10 + $0x138] sm:$0xff]  ;;  %v2467_v10 = vld [vmem:[#allocation10 + $0x140] sm:$0xff] }
  0x2f   :  { %325 = vmatpush.msra.mxu3 %v136_v36  ;;  %428 = vmatpush.msra.mxu0 %v2432_v62  ;;  %v2452_v5 = vld [vmem:[#allocation10 + $0x110] sm:$0xff]  ;;  %v2456_v6 = vld [vmem:[#allocation10 + $0x118] sm:$0xff]  ;;  %v2476_v13 = vld [vmem:[#allocation10 + $0x120] sm:$0xff]  ;;  %3561 = vst [vmem:[#allocation32_spill] sm:$0xff] %v2532_v33 }
  0x30   :  { %306 = vmatpush.msra.mxu2 %v131_v37  ;;  %284 = vmatpush.msrb.mxu1 %v138_v38  ;;  %v2461_v8 = vld [vmem:[#allocation10 + $0xf0] sm:$0xff]  ;;  %v2463_v9 = vld [vmem:[#allocation10 + $0xf8] sm:$0xff]  ;;  %v2485_v16 = vld [vmem:[#allocation10 + $0x100] sm:$0xff]  ;;  %v3504_v38 = vmov 0.0  }
  0x31   :  { %326 = vmatpush.msra.mxu3 %v132_v39  ;;  %429 = vmatpush.msra.mxu0 %v2441_v1  ;;  %v2470_v11 = vld [vmem:[#allocation10 + $0xd0] sm:$0xff]  ;;  %v2472_v12 = vld [vmem:[#allocation10 + $0xd8] sm:$0xff]  ;;  %v2494_v19 = vld [vmem:[#allocation10 + $0xe0] sm:$0xff] }
  0x32   :  { %307 = vmatpush.msra.mxu2 %v127_v40  ;;  %285 = vmatpush.msrb.mxu1 %v134_v41  ;;  %v2479_v14 = vld [vmem:[#allocation10 + $0xb0] sm:$0xff]  ;;  %v2481_v15 = vld [vmem:[#allocation10 + $0xb8] sm:$0xff]  ;;  %v2503_v22 = vld [vmem:[#allocation10 + $0xc0] sm:$0xff] }
  0x33   :  { %327 = vmatpush.msra.mxu3 %v128_v42  ;;  %430 = vmatpush.msra.mxu0 %v2450_v4  ;;  %3547 = vst [vmem:[#allocation18_spill] sm:$0xff] %v2479_v14  ;;  %v2490_v18 = vld [vmem:[#allocation10 + $0x98] sm:$0xff]  ;;  %v2497_v20 = vld [vmem:[#allocation10 + $0x70] sm:$0xff]  ;;  %v2512_v25 = vld [vmem:[#allocation10 + $0xa0] sm:$0xff] }
  0x34   :  { %308 = vmatpush.msra.mxu2 %v123_v43  ;;  %2091 = vmatmul.msk.f32.vlgmr.msrb.gmra.mxu3 %vm166_vm0, %v2389_v17  ;;  %3548 = vst [vmem:[#allocation19_spill] sm:$0xff] %v2481_v15  ;;  %v2488_v17 = vld [vmem:[#allocation10 + $0x90] sm:$0xff]  ;;  %v2499_v21 = vld [vmem:[#allocation10 + $0x78] sm:$0xff]  ;;  %v2521_v29 = vld [vmem:[#allocation10 + $0x80] sm:$0xff] }
  0x35   :  { %328 = vmatpush.msra.mxu3 %v124_v44  ;;  %286 = vmatpush.msrb.mxu1 %v130_v45  ;;  %3549 = vst [vmem:[#allocation20_spill] sm:$0xff] %v2488_v17  ;;  %v2506_v23 = vld [vmem:[#allocation10 + $0x50] sm:$0xff]  ;;  %v2508_v24 = vld [vmem:[#allocation10 + $0x58] sm:$0xff]  ;;  %v2530_v32 = vld [vmem:[#allocation10 + $0x60] sm:$0xff] }
  0x36   :  { %309 = vmatpush.msra.mxu2 %v119_v46  ;;  %431 = vmatpush.msra.mxu0 %v2458_v7  ;;  %3550 = vst [vmem:[#allocation21_spill] sm:$0xff] %v2490_v18  ;;  %v2515_v27 = vld [vmem:[#allocation10 + $0x30] sm:$0xff]  ;;  %v2517_v28 = vld [vmem:[#allocation10 + $0x38] sm:$0xff]  ;;  %v2536_v34 = vld [vmem:[#allocation10 + $0x40] sm:$0xff] }
  0x37   :  { %329 = vmatpush.msra.mxu3 %v120_v47  ;;  %287 = vmatpush.msrb.mxu1 %v126_v50  ;;  %3551 = vst [vmem:[#allocation22_spill] sm:$0xff] %v2497_v20  ;;  %v2524_v30 = vld [vmem:[#allocation10 + $0x10] sm:$0xff]  ;;  %v2526_v31 = vld [vmem:[#allocation10 + $0x18] sm:$0xff]  ;;  %v2539_v36 = vld [vmem:[#allocation10 + $0x20] sm:$0xff] }
  0x38   :  { %467 = vmatpush.msrb.mxu2 %v2399_v48  ;;  %432 = vmatpush.msra.mxu0 %v2467_v10  ;;  %3552 = vst [vmem:[#allocation23_spill] sm:$0xff] %v2499_v21  ;;  %v2542_v37 = vld [vmem:[#allocation10 + $0x1e8] sm:$0xff]  ;;  %v2550_v41 = vld [vmem:[#allocation10] sm:$0xff] }
  0x39   :  { %487 = vmatpush.msrb.mxu3 %v2401_v49  ;;  %288 = vmatpush.msrb.mxu1 %v122_v53  ;;  %3553 = vst [vmem:[#allocation24_spill] sm:$0xff] %v2506_v23  ;;  %v2548_v40 = vld [vmem:[#allocation10 + $0x1c8] sm:$0xff] }
  0x3a   :  { %468 = vmatpush.msrb.mxu2 %v2403_v51  ;;  %433 = vmatpush.msra.mxu0 %v2476_v13  ;;  %3554 = vst [vmem:[#allocation25_spill] sm:$0xff] %v2508_v24  ;;  %v2554_v42 = vld [vmem:[#allocation10 + $0x1a8] sm:$0xff] }
  0x3b   :  { %488 = vmatpush.msrb.mxu3 %v2406_v52  ;;  %289 = vmatpush.msrb.mxu1 %v118_v56  ;;  %3555 = vst [vmem:[#allocation26_spill] sm:$0xff] %v2515_v27  ;;  %v2560_v43 = vld [vmem:[#allocation10 + $0x188] sm:$0xff] }
  0x3c   :  { %469 = vmatpush.msrb.mxu2 %v2411_v54  ;;  %434 = vmatpush.msra.mxu0 %v2485_v16  ;;  %3556 = vst [vmem:[#allocation27_spill] sm:$0xff] %v2517_v28  ;;  %v2566_v44 = vld [vmem:[#allocation10 + $0x168] sm:$0xff] }
  0x3d   :  { %489 = vmatpush.msrb.mxu3 %v2413_v55  ;;  %3557 = vst [vmem:[#allocation28_spill] sm:$0xff] %v2521_v29  ;;  %v2573_v45 = vld [vmem:[#allocation10 + $0x148] sm:$0xff] }
  0x3e   :  { %470 = vmatpush.msrb.mxu2 %v2417_v57  ;;  %435 = vmatpush.msra.mxu0 %v2494_v19  ;;  %3558 = vst [vmem:[#allocation29_spill] sm:$0xff] %v2524_v30  ;;  %v2578_v46 = vld [vmem:[#allocation10 + $0x128] sm:$0xff] }
  0x3f   :  { %490 = vmatpush.msrb.mxu3 %v2419_v58  ;;  %3559 = vst [vmem:[#allocation30_spill] sm:$0xff] %v2526_v31  ;;  %v2584_v47 = vld [vmem:[#allocation10 + $0x108] sm:$0xff] }
  0x40   :  { %471 = vmatpush.msrb.mxu2 %v2426_v60  ;;  %436 = vmatpush.msra.mxu0 %v2503_v22  ;;  %3560 = vst [vmem:[#allocation31_spill] sm:$0xff] %v2530_v32  ;;  %v2590_v50 = vld [vmem:[#allocation10 + $0xe8] sm:$0xff] }
  0x41   :  { %491 = vmatpush.msrb.mxu3 %v2428_v61  ;;  %3562 = vst [vmem:[#allocation33_spill] sm:$0xff] %v2536_v34  ;;  %v2596_v53 = vld [vmem:[#allocation10 + $0xc8] sm:$0xff] }
  0x42   :  { %472 = vmatpush.msrb.mxu2 %v2435_v63  ;;  %437 = vmatpush.msra.mxu0 %v2512_v25  ;;  %3563 = vst [vmem:[#allocation34_spill] sm:$0xff] %v2539_v36  ;;  %v2602_v56 = vld [vmem:[#allocation10 + $0xa8] sm:$0xff] }
  0x43   :  { %492 = vmatpush.msrb.mxu3 %v2437_v0  ;;  %3564 = vst [vmem:[#allocation35_spill] sm:$0xff] %v2550_v41  ;;  %v2608_v26 = vld [vmem:[#allocation10 + $0x88] sm:$0xff] }
  0x44   :  { %473 = vmatpush.msrb.mxu2 %v2444_v2  ;;  %438 = vmatpush.msra.mxu0 %v2521_v29  ;;  %3565 = vst [vmem:[#allocation36_spill] sm:$0xff] %v2602_v56 }
  0x45   :  { %493 = vmatpush.msrb.mxu3 %v2446_v3  ;;  %3566 = vst [vmem:[#allocation37_spill] sm:$0xff] %v2608_v26 }
  0x46   :  { %474 = vmatpush.msrb.mxu2 %v2452_v5  ;;  %439 = vmatpush.msra.mxu0 %v2530_v32 }
  0x47   :  { %494 = vmatpush.msrb.mxu3 %v2456_v6 }
  0x48   :  { %475 = vmatpush.msrb.mxu2 %v2461_v8  ;;  %440 = vmatpush.msra.mxu0 %v2536_v34 }
  0x49   :  { %495 = vmatpush.msrb.mxu3 %v2463_v9 }
  0x4a   :  { %476 = vmatpush.msrb.mxu2 %v2470_v11  ;;  %441 = vmatpush.msra.mxu0 %v2539_v36 }
  0x4b   :  { %496 = vmatpush.msrb.mxu3 %v2472_v12 }
  0x4c   :  { %477 = vmatpush.msrb.mxu2 %v2479_v14  ;;  %442 = vmatpush.msra.mxu0 %v2550_v41 }
  0x4d   :  { %497 = vmatpush.msrb.mxu3 %v2481_v15  ;;  %443 = vmatmul.f32.vlgmr.msra.gmra.mxu0 %v3504_v38 }
  0x4e   :  { %478 = vmatpush.msrb.mxu2 %v2488_v17  ;;  %545 = vmatpush.msrb.mxu0 %v2423_v59 }
  0x4f   :  { %498 = vmatpush.msrb.mxu3 %v2490_v18 }
  0x50   :  { %479 = vmatpush.msrb.mxu2 %v2497_v20  ;;  %546 = vmatpush.msrb.mxu0 %v2432_v62 }
  0x51   :  { %499 = vmatpush.msrb.mxu3 %v2499_v21 }
  0x52   :  { %480 = vmatpush.msrb.mxu2 %v2506_v23  ;;  %547 = vmatpush.msrb.mxu0 %v2441_v1 }
  0x53   :  { %500 = vmatpush.msrb.mxu3 %v2508_v24 }
  0x54   :  { %481 = vmatpush.msrb.mxu2 %v2515_v27  ;;  %548 = vmatpush.msrb.mxu0 %v2450_v4 }
  0x55   :  { %501 = vmatpush.msrb.mxu3 %v2517_v28 }
  0x56   :  { %482 = vmatpush.msrb.mxu2 %v2524_v30  ;;  %549 = vmatpush.msrb.mxu0 %v2458_v7 }
  0x57   :  { %502 = vmatpush.msrb.mxu3 %v2526_v31 }
  0x58   :  { %550 = vmatpush.msrb.mxu0 %v2467_v10 }
  0x5a   :  { %551 = vmatpush.msrb.mxu0 %v2476_v13 }
  0x5c   :  { %552 = vmatpush.msrb.mxu0 %v2485_v16 }
  0x5e   :  { %553 = vmatpush.msrb.mxu0 %v2494_v19 }
  0x60   :  { %554 = vmatpush.msrb.mxu0 %v2503_v22 }
  0x62   :  { %555 = vmatpush.msrb.mxu0 %v2512_v25 }
  0x64   :  { %556 = vmatpush.msrb.mxu0 %v2521_v29 }
  0x66   :  { %557 = vmatpush.msrb.mxu0 %v2530_v32 }
  0x68   :  { %558 = vmatpush.msrb.mxu0 %v2536_v34 }
  0x6a   :  { %559 = vmatpush.msrb.mxu0 %v2539_v36 }
  0x6c   :  { %560 = vmatpush.msrb.mxu0 %v2550_v41 }
  0x6e   :  { %660 = vmatpush.msra.mxu0 %v2423_v59 }
  0x70   :  { %661 = vmatpush.msra.mxu0 %v2432_v62 }
  0x72   :  { %662 = vmatpush.msra.mxu0 %v2441_v1 }
  0x74   :  { %663 = vmatpush.msra.mxu0 %v2450_v4 }
  0x76   :  { %664 = vmatpush.msra.mxu0 %v2458_v7 }
  0x78   :  { %665 = vmatpush.msra.mxu0 %v2467_v10 }
  0x7a   :  { %666 = vmatpush.msra.mxu0 %v2476_v13 }
  0x7c   :  { %667 = vmatpush.msra.mxu0 %v2485_v16 }
  0x7e   :  { %668 = vmatpush.msra.mxu0 %v2494_v19 }
  0x80   :  { %669 = vmatpush.msra.mxu0 %v2503_v22 }
  0x82   :  { %670 = vmatpush.msra.mxu0 %v2512_v25 }
  0x84   :  { %671 = vmatpush.msra.mxu0 %v2521_v29 }
  0x86   :  { %672 = vmatpush.msra.mxu0 %v2530_v32 }
  0x88   :  { %673 = vmatpush.msra.mxu0 %v2536_v34 }
  0x8a   :  { %674 = vmatpush.msra.mxu0 %v2539_v36 }
  0x8b   :  { %v113_v35 = vpop.permute.xlu0 %112 }
  0x8c   :  { %vm114_vm2 = vcmp.eq.s32.totalorder %v2532_v33, %v113_v35  ;;  %v2614_v35 = vld [vmem:[#allocation10 + $0x68] sm:$0xff]  ;;  %675 = vmatpush.msra.mxu0 %v2550_v41 }
  0x8d   :  { %v2087_v39 = vsel %vm114_vm2, 1.0, %v3504_v38  ;;  %3567 = vst [vmem:[#allocation38_spill] sm:$0xff] %v2614_v35  ;;  %v2632_v33 = vld [vmem:[#allocation10 + $0x8] sm:$0xff] }
  0x8e   :  { %2092 = vmatmul.msk.f32.vlgmr.msra.gmra.mxu1 %vm250_vm1, %v2087_v39  ;;  %2094 = vmatmul.msk.f32.vlgmr.msra.gmra.mxu2 %vm250_vm1, %v2087_v39  ;;  %3570 = vst [vmem:[#allocation41_spill] sm:$0xff] %v2632_v33 }
  0x8f   :  { %2095 = vmatmul.msk.f32.vlgmr.msra.gmra.mxu3 %vm250_vm1, %v2087_v39  ;;  %447 = vmatpush.msra.mxu1 %v2542_v37 }
  0x90   :  { %585 = vmatpush.msra.mxu2 %v2399_v48  ;;  %605 = vmatpush.msra.mxu3 %v2401_v49 }
  0x91   :  { %448 = vmatpush.msra.mxu1 %v2548_v40 }
  0x92   :  { %586 = vmatpush.msra.mxu2 %v2403_v51  ;;  %606 = vmatpush.msra.mxu3 %v2406_v52 }
  0x93   :  { %449 = vmatpush.msra.mxu1 %v2554_v42 }
  0x94   :  { %587 = vmatpush.msra.mxu2 %v2411_v54  ;;  %607 = vmatpush.msra.mxu3 %v2413_v55 }
  0x95   :  { %450 = vmatpush.msra.mxu1 %v2560_v43 }
  0x96   :  { %2093 = vmatmul.msk.f32.vlgmr.msrb.gmra.mxu1 %vm250_vm1, %v2087_v39  ;;  %483 = vmatmul.f32.vlgmr.msrb.gmra.mxu2 %v3504_v38  ;;  %v2620_v39 = vld [vmem:[#allocation10 + $0x48] sm:$0xff] }
  0x97   :  { %451 = vmatpush.msra.mxu1 %v2566_v44  ;;  %503 = vmatmul.f32.vlgmr.msrb.gmra.mxu3 %v3504_v38  ;;  %3568 = vst [vmem:[#allocation39_spill] sm:$0xff] %v2620_v39  ;;  %v2626_v38 = vld [vmem:[#allocation10 + $0x28] sm:$0xff] }
  0x98   :  { %588 = vmatpush.msra.mxu2 %v2417_v57  ;;  %608 = vmatpush.msra.mxu3 %v2419_v58  ;;  %3569 = vst [vmem:[#allocation40_spill] sm:$0xff] %v2626_v38 }
  0x99   :  { %452 = vmatpush.msra.mxu1 %v2573_v45 }
  0x9a   :  { %589 = vmatpush.msra.mxu2 %v2426_v60  ;;  %609 = vmatpush.msra.mxu3 %v2428_v61 }
  0x9b   :  { %453 = vmatpush.msra.mxu1 %v2578_v46 }
  0x9c   :  { %590 = vmatpush.msra.mxu2 %v2435_v63  ;;  %610 = vmatpush.msra.mxu3 %v2437_v0 }
  0x9d   :  { %454 = vmatpush.msra.mxu1 %v2584_v47 }
  0x9e   :  { %591 = vmatpush.msra.mxu2 %v2444_v2  ;;  %611 = vmatpush.msra.mxu3 %v2446_v3 }
  0x9f   :  { %455 = vmatpush.msra.mxu1 %v2590_v50 }
  0xa0   :  { %592 = vmatpush.msra.mxu2 %v2452_v5  ;;  %612 = vmatpush.msra.mxu3 %v2456_v6 }
  0xa1   :  { %456 = vmatpush.msra.mxu1 %v2596_v53 }
  0xa2   :  { %593 = vmatpush.msra.mxu2 %v2461_v8  ;;  %613 = vmatpush.msra.mxu3 %v2463_v9 }
  0xa3   :  { %457 = vmatpush.msra.mxu1 %v2602_v56 }
  0xa4   :  { %594 = vmatpush.msra.mxu2 %v2470_v11  ;;  %614 = vmatpush.msra.mxu3 %v2472_v12 }
  0xa5   :  { %458 = vmatpush.msra.mxu1 %v2608_v26 }
  0xa6   :  { %595 = vmatpush.msra.mxu2 %v2479_v14  ;;  %615 = vmatpush.msra.mxu3 %v2481_v15  ;;  %v3571_v15 = vmov 0.0  }
  0xa7   :  { %459 = vmatpush.msra.mxu1 %v2614_v35 }
  0xa8   :  { %596 = vmatpush.msra.mxu2 %v2488_v17  ;;  %616 = vmatpush.msra.mxu3 %v2490_v18 }
  0xa9   :  { %460 = vmatpush.msra.mxu1 %v2620_v39 }
  0xaa   :  { %597 = vmatpush.msra.mxu2 %v2497_v20  ;;  %617 = vmatpush.msra.mxu3 %v2499_v21 }
  0xab   :  { %461 = vmatpush.msra.mxu1 %v2626_v38 }
  0xac   :  { %598 = vmatpush.msra.mxu2 %v2506_v23  ;;  %618 = vmatpush.msra.mxu3 %v2508_v24 }
  0xad   :  { %462 = vmatpush.msra.mxu1 %v2632_v33 }
  0xae   :  { %463 = vmatmul.f32.vlgmr.msra.gmra.mxu1 %v3571_v15  ;;  %599 = vmatpush.msra.mxu2 %v2515_v27  ;;  %v3572_v15 = vld [vmem:[#allocation19_spill] sm:$0xff] }
  0xaf   :  { %565 = vmatpush.msrb.mxu1 %v2542_v37  ;;  %619 = vmatpush.msra.mxu3 %v2517_v28 }
  0xb0   :  { %600 = vmatpush.msra.mxu2 %v2524_v30 }
  0xb1   :  { %566 = vmatpush.msrb.mxu1 %v2548_v40  ;;  %620 = vmatpush.msra.mxu3 %v2526_v31 }
  0xb2   :  { %700 = vmatpush.msrb.mxu2 %v2399_v48 }
  0xb3   :  { %567 = vmatpush.msrb.mxu1 %v2554_v42  ;;  %720 = vmatpush.msrb.mxu3 %v2401_v49 }
  0xb4   :  { %701 = vmatpush.msrb.mxu2 %v2403_v51 }
  0xb5   :  { %568 = vmatpush.msrb.mxu1 %v2560_v43  ;;  %721 = vmatpush.msrb.mxu3 %v2406_v52 }
  0xb6   :  { %702 = vmatpush.msrb.mxu2 %v2411_v54 }
  0xb7   :  { %569 = vmatpush.msrb.mxu1 %v2566_v44  ;;  %722 = vmatpush.msrb.mxu3 %v2413_v55 }
  0xb8   :  { %703 = vmatpush.msrb.mxu2 %v2417_v57 }
  0xb9   :  { %570 = vmatpush.msrb.mxu1 %v2573_v45  ;;  %723 = vmatpush.msrb.mxu3 %v2419_v58 }
  0xba   :  { %704 = vmatpush.msrb.mxu2 %v2426_v60 }
  0xbb   :  { %571 = vmatpush.msrb.mxu1 %v2578_v46  ;;  %724 = vmatpush.msrb.mxu3 %v2428_v61 }
  0xbc   :  { %705 = vmatpush.msrb.mxu2 %v2435_v63 }
  0xbd   :  { %572 = vmatpush.msrb.mxu1 %v2584_v47  ;;  %725 = vmatpush.msrb.mxu3 %v2437_v0 }
  0xbe   :  { %706 = vmatpush.msrb.mxu2 %v2444_v2 }
  0xbf   :  { %573 = vmatpush.msrb.mxu1 %v2590_v50  ;;  %726 = vmatpush.msrb.mxu3 %v2446_v3 }
  0xc0   :  { %707 = vmatpush.msrb.mxu2 %v2452_v5 }
  0xc1   :  { %574 = vmatpush.msrb.mxu1 %v2596_v53  ;;  %727 = vmatpush.msrb.mxu3 %v2456_v6 }
  0xc2   :  { %708 = vmatpush.msrb.mxu2 %v2461_v8 }
  0xc3   :  { %575 = vmatpush.msrb.mxu1 %v2602_v56  ;;  %728 = vmatpush.msrb.mxu3 %v2463_v9 }
  0xc4   :  { %709 = vmatpush.msrb.mxu2 %v2470_v11 }
  0xc5   :  { %576 = vmatpush.msrb.mxu1 %v2608_v26  ;;  %729 = vmatpush.msrb.mxu3 %v2472_v12 }
  0xc6   :  { %710 = vmatpush.msrb.mxu2 %v2479_v14 }
  0xc7   :  { %577 = vmatpush.msrb.mxu1 %v2614_v35  ;;  %730 = vmatpush.msrb.mxu3 %v3572_v15 }
  0xc8   :  { %711 = vmatpush.msrb.mxu2 %v2488_v17 }
  0xc9   :  { %578 = vmatpush.msrb.mxu1 %v2620_v39  ;;  %731 = vmatpush.msrb.mxu3 %v2490_v18 }
  0xca   :  { %712 = vmatpush.msrb.mxu2 %v2497_v20 }
  0xcb   :  { %579 = vmatpush.msrb.mxu1 %v2626_v38  ;;  %732 = vmatpush.msrb.mxu3 %v2499_v21 }
  0xcc   :  { %713 = vmatpush.msrb.mxu2 %v2506_v23 }
  0xcd   :  { %580 = vmatpush.msrb.mxu1 %v2632_v33  ;;  %733 = vmatpush.msrb.mxu3 %v2508_v24 }
  0xce   :  { %714 = vmatpush.msrb.mxu2 %v2515_v27 }
  0xcf   :  { %680 = vmatpush.msra.mxu1 %v2542_v37  ;;  %734 = vmatpush.msrb.mxu3 %v2517_v28  ;;  %v334_v28 = vld [vmem:[#allocation9] sm:$0xf] }
  0xd0   :  { %715 = vmatpush.msrb.mxu2 %v2524_v30  ;;  %v207_v30 = vpop.f32.mrf.mxu3  ;;  %v336_v36 = vperm.slane %v334_v28, 0  ;;  %v338_v21 = vperm.slane %v334_v28, 2  ;;  %v339_v32 = vperm.slane %v334_v28, 3 }
  0xd1   :  { %681 = vmatpush.msra.mxu1 %v2548_v40  ;;  %735 = vmatpush.msrb.mxu3 %v2526_v31  ;;  %v187_v31 = vpop.f32.mrf.mxu2 }
  0xd3   :  { %682 = vmatpush.msra.mxu1 %v2554_v42 }
  0xd5   :  { %683 = vmatpush.msra.mxu1 %v2560_v43 }
  0xd7   :  { %684 = vmatpush.msra.mxu1 %v2566_v44 }
  0xd8   :  { %v247_v27 = vpop.f32.mrf.mxu3 }
  0xd9   :  { %685 = vmatpush.msra.mxu1 %v2573_v45  ;;  %v227_v41 = vpop.f32.mrf.mxu2 }
  0xdb   :  { %686 = vmatpush.msra.mxu1 %v2578_v46 }
  0xdd   :  { %687 = vmatpush.msra.mxu1 %v2584_v47 }
  0xdf   :  { %688 = vmatpush.msra.mxu1 %v2590_v50 }
  0xe1   :  { %689 = vmatpush.msra.mxu1 %v2596_v53 }
  0xe3   :  { %690 = vmatpush.msra.mxu1 %v2602_v56 }
  0xe5   :  { %691 = vmatpush.msra.mxu1 %v2608_v26 }
  0xe7   :  { %692 = vmatpush.msra.mxu1 %v2614_v35 }
  0xe9   :  { %693 = vmatpush.msra.mxu1 %v2620_v39  ;;  %v337_v39 = vperm.slane %v334_v28, 1 }
  0xeb   :  { %694 = vmatpush.msra.mxu1 %v2626_v38 }
  0xed   :  { %695 = vmatpush.msra.mxu1 %v2632_v33 }
 0x10b   :  { %v271_v24 = vpop.f32.mrf.mxu1 }
 0x10c   :  { %v272_v23 = vadd.f32 %v271_v24, %v187_v31 }
 0x10e   :  { %v344_v34 = vadd.f32 %v336_v36, %v272_v23 }
 0x110   :  { %348 = vst [vmem:[#allocation2] sm:$0xff] %v344_v34  ;;  %v444_v34 = vpop.f32.mrf.mxu0 }
 0x111   :  { %v311_v20 = vpop.f32.mrf.mxu2 }
 0x112   :  { %v312_v35 = vadd.f32 %v311_v20, %v227_v41  ;;  %v331_v18 = vpop.f32.mrf.mxu3 }
 0x113   :  { %v332_v17 = vadd.f32 %v331_v18, %v247_v27  ;;  %v291_v38 = vpop.f32.mrf.mxu1 }
 0x114   :  { %v346_v26 = vadd.f32 %v338_v21, %v312_v35  ;;  %v292_v33 = vadd.f32 %v291_v38, %v207_v30 }
 0x115   :  { %v347_v29 = vadd.f32 %v339_v32, %v332_v17 }
 0x116   :  { %350 = vst [vmem:[#allocation2 + $0x10] sm:$0xff] %v346_v26  ;;  %v345_v15 = vadd.f32 %v337_v39, %v292_v33  ;;  %v3573_v26 = vld [vmem:[#allocation32_spill] sm:$0xff] }
 0x117   :  { %351 = vst [vmem:[#allocation2 + $0x18] sm:$0xff] %v347_v29  ;;  %vm353_vm6 = vcmp.lt.s32.totalorder %v3573_v26, 32  ;;  %vm355_vm7 = vcmp.lt.s32.totalorder %v3573_v26, 64  ;;  %v3117_v26 = vld [vmem:[#allocation10 + $0x80] sm:$0xff] }
 0x118   :  { %349 = vst [vmem:[#allocation2 + $0x8] sm:$0xff] %v345_v15 }
 0x119   :  { %v484_v14 = vpop.f32.mrf.mxu2 }
 0x11a   :  { %v504_v56 = vpop.f32.mrf.mxu3  ;;  %v512_v24 = vrot.slane %v484_v14, 6 }
 0x11b   :  { %v513_v23 = vrot.slane %v504_v56, 5 }
 0x11d   :  { %v517_v28 = vsel %vm516_vm3, %v512_v24, %v513_v23 }
 0x11f   :  { %v362_v21 = vld [vmem:[#allocation2] ss:$8 sm:$0xf] }
 0x12b   :  { %v464_v31 = vpop.f32.mrf.mxu1 }
 0x12c   :  { %v511_v20 = vrot.slane %v464_v31, 7 }
 0x12e   :  { %v515_v18 = vsel %vm514_vm4, %v444_v34, %v511_v20 }
 0x12f   :  { %v519_v17 = vsel %vm518_vm5, %v515_v18, %v517_v28 }
 0x130   :  { %v521_v27 = vadd.f32 %v519_v17, %v362_v21  ;;  %v544_v21 = vld [vmem:[#allocation2 + $0x1] ss:$8 sm:$0xf] }
 0x132   :  { %2114 = vtanh.f32 %v521_v27 }
 0x138   :  { %v2115_v29 = vpop.eup %2114 }
 0x139   :  { %v523_v30 = vmul.f32 0.5, %v2115_v29  ;;  %v526_v32 = vrot.slane %v2115_v29, 1  ;;  %v535_v38 = vrot.slane %v2115_v29, 2  ;;  %v530_v35 = vrot.slane %v2115_v29, 3 }
 0x13b   :  { %v524_v14 = vadd.f32 0.5, %v523_v30  ;;  %v528_v33 = vmul.f32 0.5, %v526_v32  ;;  %v532_v24 = vmul.f32 0.5, %v530_v35 }
 0x13d   :  { %v529_v36 = vadd.f32 0.5, %v528_v33  ;;  %v537_v56 = vmul.f32 %v535_v38, %v524_v14  ;;  %v533_v23 = vadd.f32 0.5, %v532_v24 }
 0x13f   :  { %v534_v41 = vmul.f32 0.0, %v529_v36 }
 0x141   :  { %v538_v39 = vadd.f32 %v537_v56, %v534_v41 }
 0x143   :  { %2116 = vtanh.f32 %v538_v39  ;;  %v2735_v15 = vsel %vm353_vm6, %v538_v39, 0.0 }
 0x149   :  { %v2117_v31 = vpop.eup %2116 }
 0x14a   :  { %v540_v34 = vmul.f32 %v2117_v31, %v533_v23 }
 0x14c   :  { %2096 = vmatmul.msk.f32.vlgmr.msrb.gmra.mxu0 %vm353_vm6, %v540_v34  ;;  %2097 = vmatmul.msk.f32.vlgmr.msrb.gmra.mxu1 %vm353_vm6, %v540_v34  ;;  %v2737_v20 = vsel %vm353_vm6, %v540_v34, 0.0 }
 0x14d   :  { %2098 = vmatmul.msk.f32.vlgmr.msra.gmra.mxu2 %vm353_vm6, %v540_v34  ;;  %2099 = vmatmul.msk.f32.vlgmr.msra.gmra.mxu3 %vm353_vm6, %v540_v34 }
 0x14e   :  { %838 = vmatpush.msrb.mxu0 %v2423_v59  ;;  %858 = vmatpush.msrb.mxu1 %v2542_v37  ;;  %v3594_v37 = vld [vmem:[#allocation41_spill] sm:$0xff] }
 0x14f   :  { %878 = vmatpush.msra.mxu2 %v2399_v48  ;;  %898 = vmatpush.msra.mxu3 %v2401_v49  ;;  %v3574_v48 = vld [vmem:[#allocation36_spill] sm:$0xff]  ;;  %v3575_v49 = vld [vmem:[#allocation18_spill] sm:$0xff] }
 0x150   :  { %839 = vmatpush.msrb.mxu0 %v2432_v62  ;;  %859 = vmatpush.msrb.mxu1 %v2548_v40  ;;  %v3595_v40 = vld [vmem:[#allocation29_spill] sm:$0xff] }
 0x151   :  { %879 = vmatpush.msra.mxu2 %v2403_v51  ;;  %899 = vmatpush.msra.mxu3 %v2406_v52  ;;  %v3576_v51 = vld [vmem:[#allocation19_spill] sm:$0xff]  ;;  %v3577_v52 = vld [vmem:[#allocation28_spill] sm:$0xff] }
 0x152   :  { %840 = vmatpush.msrb.mxu0 %v2441_v1  ;;  %860 = vmatpush.msrb.mxu1 %v2554_v42  ;;  %v3596_v42 = vld [vmem:[#allocation30_spill] sm:$0xff] }
 0x153   :  { %880 = vmatpush.msra.mxu2 %v2411_v54  ;;  %900 = vmatpush.msra.mxu3 %v2413_v55  ;;  %v3578_v54 = vld [vmem:[#allocation37_spill] sm:$0xff]  ;;  %v3579_v55 = vld [vmem:[#allocation20_spill] sm:$0xff] }
 0x154   :  { %841 = vmatpush.msrb.mxu0 %v2450_v4  ;;  %861 = vmatpush.msrb.mxu1 %v2560_v43 }
 0x155   :  { %881 = vmatpush.msra.mxu2 %v2417_v57  ;;  %901 = vmatpush.msra.mxu3 %v2419_v58  ;;  %v3580_v57 = vld [vmem:[#allocation21_spill] sm:$0xff]  ;;  %v3581_v58 = vld [vmem:[#allocation31_spill] sm:$0xff] }
 0x156   :  { %842 = vmatpush.msrb.mxu0 %v2458_v7  ;;  %862 = vmatpush.msrb.mxu1 %v2566_v44 }
 0x157   :  { %882 = vmatpush.msra.mxu2 %v2426_v60  ;;  %902 = vmatpush.msra.mxu3 %v2428_v61  ;;  %v3582_v60 = vld [vmem:[#allocation38_spill] sm:$0xff] }
 0x158   :  { %843 = vmatpush.msrb.mxu0 %v2467_v10  ;;  %863 = vmatpush.msrb.mxu1 %v2573_v45  ;;  %v3583_v61 = vld [vmem:[#allocation22_spill] sm:$0xff] }
 0x159   :  { %883 = vmatpush.msra.mxu2 %v2435_v63  ;;  %903 = vmatpush.msra.mxu3 %v2437_v0  ;;  %v3584_v63 = vld [vmem:[#allocation23_spill] sm:$0xff]  ;;  %v3585_v0 = vld [vmem:[#allocation33_spill] sm:$0xff] }
 0x15a   :  { %844 = vmatpush.msrb.mxu0 %v2476_v13  ;;  %864 = vmatpush.msrb.mxu1 %v2578_v46 }
 0x15b   :  { %884 = vmatpush.msra.mxu2 %v2444_v2  ;;  %904 = vmatpush.msra.mxu3 %v2446_v3  ;;  %v3586_v2 = vld [vmem:[#allocation39_spill] sm:$0xff]  ;;  %v3587_v3 = vld [vmem:[#allocation24_spill] sm:$0xff] }
 0x15c   :  { %845 = vmatpush.msrb.mxu0 %v2485_v16  ;;  %865 = vmatpush.msrb.mxu1 %v2584_v47 }
 0x15d   :  { %885 = vmatpush.msra.mxu2 %v2452_v5  ;;  %905 = vmatpush.msra.mxu3 %v2456_v6  ;;  %v3588_v5 = vld [vmem:[#allocation25_spill] sm:$0xff]  ;;  %v3589_v6 = vld [vmem:[#allocation34_spill] sm:$0xff] }
 0x15e   :  { %846 = vmatpush.msrb.mxu0 %v2494_v19  ;;  %866 = vmatpush.msrb.mxu1 %v2590_v50 }
 0x15f   :  { %886 = vmatpush.msra.mxu2 %v2461_v8  ;;  %906 = vmatpush.msra.mxu3 %v2463_v9  ;;  %v3590_v8 = vld [vmem:[#allocation40_spill] sm:$0xff]  ;;  %v3591_v9 = vld [vmem:[#allocation26_spill] sm:$0xff] }
 0x160   :  { %847 = vmatpush.msrb.mxu0 %v2503_v22  ;;  %867 = vmatpush.msrb.mxu1 %v2596_v53 }
 0x161   :  { %887 = vmatpush.msra.mxu2 %v2470_v11  ;;  %907 = vmatpush.msra.mxu3 %v2472_v12  ;;  %v3592_v11 = vld [vmem:[#allocation27_spill] sm:$0xff] }
 0x162   :  { %848 = vmatpush.msrb.mxu0 %v2512_v25  ;;  %868 = vmatpush.msrb.mxu1 %v3574_v48  ;;  %v3593_v12 = vld [vmem:[#allocation35_spill] sm:$0xff] }
 0x163   :  { %888 = vmatpush.msra.mxu2 %v3575_v49  ;;  %908 = vmatpush.msra.mxu3 %v3576_v51 }
 0x164   :  { %849 = vmatpush.msrb.mxu0 %v3577_v52  ;;  %869 = vmatpush.msrb.mxu1 %v3578_v54 }
 0x165   :  { %889 = vmatpush.msra.mxu2 %v3579_v55  ;;  %909 = vmatpush.msra.mxu3 %v3580_v57 }
 0x166   :  { %850 = vmatpush.msrb.mxu0 %v3581_v58  ;;  %870 = vmatpush.msrb.mxu1 %v3582_v60 }
 0x167   :  { %890 = vmatpush.msra.mxu2 %v3583_v61  ;;  %910 = vmatpush.msra.mxu3 %v3584_v63 }
 0x168   :  { %851 = vmatpush.msrb.mxu0 %v3585_v0  ;;  %871 = vmatpush.msrb.mxu1 %v3586_v2 }
 0x169   :  { %891 = vmatpush.msra.mxu2 %v3587_v3  ;;  %911 = vmatpush.msra.mxu3 %v3588_v5 }
 0x16a   :  { %852 = vmatpush.msrb.mxu0 %v3589_v6  ;;  %872 = vmatpush.msrb.mxu1 %v3590_v8  ;;  %v2829_v8 = vld [vmem:[#allocation10 + $0x1e8] sm:$0xff] }
 0x16b   :  { %892 = vmatpush.msra.mxu2 %v3591_v9  ;;  %912 = vmatpush.msra.mxu3 %v3592_v11  ;;  %v2831_v9 = vld [vmem:[#allocation10 + $0x1f0] sm:$0xff]  ;;  %v2833_v11 = vld [vmem:[#allocation10 + $0x1f8] sm:$0xff] }
 0x16c   :  { %853 = vmatpush.msrb.mxu0 %v3593_v12  ;;  %873 = vmatpush.msrb.mxu1 %v3594_v37  ;;  %v2838_v12 = vld [vmem:[#allocation10 + $0x1c8] sm:$0xff]  ;;  %v2840_v37 = vld [vmem:[#allocation10 + $0x1d0] sm:$0xff] }
 0x16d   :  { %893 = vmatpush.msra.mxu2 %v3595_v40  ;;  %913 = vmatpush.msra.mxu3 %v3596_v42  ;;  %v2842_v40 = vld [vmem:[#allocation10 + $0x1d8] sm:$0xff]  ;;  %v2847_v42 = vld [vmem:[#allocation10 + $0x1a8] sm:$0xff] }
 0x1c9   :  { %v582_v43 = vpop.f32.mrf.mxu1  ;;  %v562_v53 = vpop.f32.mrf.mxu0 }
 0x1ca   :  { %v629_v44 = vrot.slane %v582_v43, 7  ;;  %v2849_v43 = vld [vmem:[#allocation10 + $0x1b0] sm:$0xff] }
 0x1cc   :  { %v632_v28 = vsel %vm514_vm4, %v562_v53, %v629_v44  ;;  %v2851_v44 = vld [vmem:[#allocation10 + $0x1b8] sm:$0xff]  ;;  %v2866_v53 = vld [vmem:[#allocation10 + $0x170] sm:$0xff] }
 0x1d0   :  { %v602_v45 = vpop.f32.mrf.mxu2  ;;  %v622_v46 = vpop.f32.mrf.mxu3 }
 0x1d1   :  { %v630_v47 = vrot.slane %v602_v45, 6  ;;  %v631_v50 = vrot.slane %v622_v46, 5  ;;  %v2856_v45 = vld [vmem:[#allocation10 + $0x188] sm:$0xff]  ;;  %v2858_v46 = vld [vmem:[#allocation10 + $0x190] sm:$0xff] }
 0x1d3   :  { %v633_v18 = vsel %vm516_vm3, %v630_v47, %v631_v50  ;;  %v2860_v47 = vld [vmem:[#allocation10 + $0x198] sm:$0xff]  ;;  %v2864_v50 = vld [vmem:[#allocation10 + $0x168] sm:$0xff] }
 0x1d4   :  { %v634_v17 = vsel %vm518_vm5, %v632_v28, %v633_v18  ;;  %v2868_v28 = vld [vmem:[#allocation10 + $0x178] sm:$0xff]  ;;  %v2871_v18 = vld [vmem:[#allocation10 + $0x148] sm:$0xff] }
 0x1d5   :  { %v636_v27 = vadd.f32 %v634_v17, %v544_v21  ;;  %v2873_v21 = vld [vmem:[#allocation10 + $0x150] sm:$0xff]  ;;  %v2877_v17 = vld [vmem:[#allocation10 + $0x158] sm:$0xff] }
 0x1d7   :  { %2118 = vtanh.f32 %v636_v27  ;;  %v2880_v27 = vld [vmem:[#allocation10 + $0x128] sm:$0xff] }
 0x1dd   :  { %v2119_v29 = vpop.eup %2118 }
 0x1de   :  { %v638_v30 = vmul.f32 0.5, %v2119_v29  ;;  %v641_v32 = vrot.slane %v2119_v29, 1  ;;  %v650_v38 = vrot.slane %v2119_v29, 2  ;;  %v645_v35 = vrot.slane %v2119_v29, 3  ;;  %v2882_v29 = vld [vmem:[#allocation10 + $0x130] sm:$0xff] }
 0x1e0   :  { %v639_v14 = vadd.f32 0.5, %v638_v30  ;;  %v643_v33 = vmul.f32 0.5, %v641_v32  ;;  %v647_v23 = vmul.f32 0.5, %v645_v35  ;;  %v2886_v30 = vld [vmem:[#allocation10 + $0x138] sm:$0xff]  ;;  %v2889_v32 = vld [vmem:[#allocation10 + $0x108] sm:$0xff]  ;;  %v2909_v35 = vld [vmem:[#allocation10 + $0xd0] sm:$0xff] }
 0x1e2   :  { %v644_v36 = vadd.f32 0.5, %v643_v33  ;;  %v652_v56 = vmul.f32 %v650_v38, %v639_v14  ;;  %v648_v31 = vadd.f32 0.5, %v647_v23  ;;  %v2891_v14 = vld [vmem:[#allocation10 + $0x110] sm:$0xff]  ;;  %v2895_v33 = vld [vmem:[#allocation10 + $0x118] sm:$0xff]  ;;  %v2917_v23 = vld [vmem:[#allocation10 + $0x20] sm:$0xff] }
 0x1e3   :  { %v2900_v38 = vld [vmem:[#allocation10 + $0xf0] sm:$0xff] }
 0x1e4   :  { %v649_v41 = vmul.f32 %v644_v36, %v2735_v15  ;;  %v2898_v36 = vld [vmem:[#allocation10 + $0xe8] sm:$0xff] }
 0x1e6   :  { %v653_v39 = vadd.f32 %v652_v56, %v649_v41  ;;  %v2904_v41 = vld [vmem:[#allocation10 + $0xf8] sm:$0xff]  ;;  %v2907_v56 = vld [vmem:[#allocation10 + $0xc8] sm:$0xff] }
 0x1e8   :  { %2120 = vtanh.f32 %v653_v39  ;;  %v657_v24 = vsel %vm355_vm7, %v653_v39, %v2735_v15  ;;  %v2911_v39 = vld [vmem:[#allocation10 + $0x40] sm:$0xff] }
 0x1ee   :  { %v2121_v34 = vpop.eup %2120 }
 0x1ef   :  { %v655_v48 = vmul.f32 %v2121_v34, %v648_v31  ;;  %v2920_v31 = vld [vmem:[#allocation10 + $0xa8] sm:$0xff]  ;;  %v2922_v34 = vld [vmem:[#allocation10 + $0xb0] sm:$0xff] }
 0x1f1   :  { %v656_v49 = vsel %vm355_vm7, %v655_v48, %v2737_v20  ;;  %v2927_v48 = vld [vmem:[#allocation10 + $0xb8] sm:$0xff] }
 0x1f2   :  { %676 = vmatmul.f32.vlgmr.msra.gmra.mxu0 %v656_v49  ;;  %696 = vmatmul.f32.vlgmr.msra.gmra.mxu1 %v656_v49 }
 0x1f3   :  { %716 = vmatmul.f32.vlgmr.msrb.gmra.mxu2 %v656_v49  ;;  %736 = vmatmul.f32.vlgmr.msrb.gmra.mxu3 %v656_v49  ;;  %v2929_v49 = vld [vmem:[#allocation10] sm:$0xff] }
 0x1f4   :  { %1016 = vmatpush.msra.mxu0 %v2423_v59  ;;  %1036 = vmatpush.msra.mxu1 %v2829_v8 }
 0x1f5   :  { %1056 = vmatpush.msrb.mxu2 %v2831_v9  ;;  %1076 = vmatpush.msrb.mxu3 %v2833_v11 }
 0x1f6   :  { %1017 = vmatpush.msra.mxu0 %v2432_v62  ;;  %1037 = vmatpush.msra.mxu1 %v2838_v12 }
 0x1f7   :  { %1057 = vmatpush.msrb.mxu2 %v2840_v37  ;;  %1077 = vmatpush.msrb.mxu3 %v2842_v40 }
 0x1f8   :  { %1018 = vmatpush.msra.mxu0 %v2441_v1  ;;  %1038 = vmatpush.msra.mxu1 %v2847_v42 }
 0x1f9   :  { %1058 = vmatpush.msrb.mxu2 %v2849_v43  ;;  %1078 = vmatpush.msrb.mxu3 %v2851_v44 }
 0x1fa   :  { %1019 = vmatpush.msra.mxu0 %v2450_v4  ;;  %1039 = vmatpush.msra.mxu1 %v2856_v45 }
 0x1fb   :  { %1059 = vmatpush.msrb.mxu2 %v2858_v46  ;;  %1079 = vmatpush.msrb.mxu3 %v2860_v47 }
 0x1fc   :  { %1020 = vmatpush.msra.mxu0 %v2458_v7  ;;  %1040 = vmatpush.msra.mxu1 %v2864_v50 }
 0x1fd   :  { %1060 = vmatpush.msrb.mxu2 %v2866_v53  ;;  %1080 = vmatpush.msrb.mxu3 %v2868_v28 }
 0x1fe   :  { %1021 = vmatpush.msra.mxu0 %v2467_v10  ;;  %1041 = vmatpush.msra.mxu1 %v2871_v18 }
 0x1ff   :  { %1061 = vmatpush.msrb.mxu2 %v2873_v21  ;;  %1081 = vmatpush.msrb.mxu3 %v2877_v17 }
 0x200   :  { %1022 = vmatpush.msra.mxu0 %v2476_v13  ;;  %1042 = vmatpush.msra.mxu1 %v2880_v27 }
 0x201   :  { %1062 = vmatpush.msrb.mxu2 %v2882_v29  ;;  %1082 = vmatpush.msrb.mxu3 %v2886_v30 }
 0x202   :  { %1023 = vmatpush.msra.mxu0 %v2485_v16  ;;  %1043 = vmatpush.msra.mxu1 %v2889_v32 }
 0x203   :  { %1063 = vmatpush.msrb.mxu2 %v2891_v14  ;;  %1083 = vmatpush.msrb.mxu3 %v2895_v33 }
 0x204   :  { %1024 = vmatpush.msra.mxu0 %v2494_v19  ;;  %v659_v19 = vld [vmem:[#allocation2 + $0x2] ss:$8 sm:$0xf]  ;;  %1044 = vmatpush.msra.mxu1 %v2898_v36 }
 0x205   :  { %1064 = vmatpush.msrb.mxu2 %v2900_v38  ;;  %1084 = vmatpush.msrb.mxu3 %v2904_v41 }
 0x206   :  { %1025 = vmatpush.msra.mxu0 %v2503_v22  ;;  %1045 = vmatpush.msra.mxu1 %v2907_v56 }
 0x207   :  { %1065 = vmatpush.msrb.mxu2 %v2909_v35 }
 0x208   :  { %1026 = vmatpush.msra.mxu0 %v2512_v25  ;;  %1046 = vmatpush.msra.mxu1 %v2920_v31 }
 0x209   :  { %1066 = vmatpush.msrb.mxu2 %v2922_v34 }
 0x20a   :  { %1027 = vmatpush.msra.mxu0 %v3577_v52 }
 0x20c   :  { %1028 = vmatpush.msra.mxu0 %v3581_v58 }
 0x20e   :  { %1029 = vmatpush.msra.mxu0 %v2911_v39 }
 0x210   :  { %1030 = vmatpush.msra.mxu0 %v2917_v23 }
 0x212   :  { %1031 = vmatpush.msra.mxu0 %v2929_v49 }
 0x26f   :  { %v697_v59 = vpop.f32.mrf.mxu1  ;;  %v677_v15 = vpop.f32.mrf.mxu0 }
 0x270   :  { %v744_v62 = vrot.slane %v697_v59, 7  ;;  %v2932_v59 = vld [vmem:[#allocation10 + $0x88] sm:$0xff] }
 0x271   :  { %1047 = vmatpush.msra.mxu1 %v2932_v59 }
 0x272   :  { %v747_v13 = vsel %vm514_vm4, %v677_v15, %v744_v62  ;;  %v2934_v62 = vld [vmem:[#allocation10 + $0x90] sm:$0xff]  ;;  %v2952_v15 = vld [vmem:[#allocation10 + $0x48] sm:$0xff] }
 0x273   :  { %1067 = vmatpush.msrb.mxu2 %v2934_v62  ;;  %3601 = vst [vmem:[#allocation37_spill] sm:$0xff] %v2952_v15 }
 0x276   :  { %v717_v1 = vpop.f32.mrf.mxu2  ;;  %v737_v4 = vpop.f32.mrf.mxu3 }
 0x277   :  { %v745_v7 = vrot.slane %v717_v1, 6  ;;  %v746_v10 = vrot.slane %v737_v4, 5  ;;  %v2939_v1 = vld [vmem:[#allocation10 + $0x98] sm:$0xff]  ;;  %v2942_v4 = vld [vmem:[#allocation10 + $0x68] sm:$0xff] }
 0x278   :  { %3597 = vst [vmem:[#allocation36_spill] sm:$0xff] %v2939_v1  ;;  %1048 = vmatpush.msra.mxu1 %v2942_v4 }
 0x279   :  { %v748_v16 = vsel %vm516_vm3, %v745_v7, %v746_v10  ;;  %3598 = vst [vmem:[#allocation18_spill] sm:$0xff] %v2942_v4  ;;  %v2944_v7 = vld [vmem:[#allocation10 + $0x70] sm:$0xff]  ;;  %v2949_v10 = vld [vmem:[#allocation10 + $0x78] sm:$0xff] }
 0x27a   :  { %v749_v22 = vsel %vm518_vm5, %v747_v13, %v748_v16  ;;  %3599 = vst [vmem:[#allocation19_spill] sm:$0xff] %v2944_v7  ;;  %v2954_v13 = vld [vmem:[#allocation10 + $0x50] sm:$0xff]  ;;  %1068 = vmatpush.msrb.mxu2 %v2944_v7  ;;  %v2958_v16 = vld [vmem:[#allocation10 + $0x58] sm:$0xff]  ;;  %1049 = vmatpush.msra.mxu1 %v2952_v15 }
 0x27b   :  { %v751_v20 = vadd.f32 %v749_v22, %v659_v19  ;;  %3600 = vst [vmem:[#allocation28_spill] sm:$0xff] %v2949_v10  ;;  %v2961_v19 = vld [vmem:[#allocation10 + $0x28] sm:$0xff]  ;;  %v2963_v22 = vld [vmem:[#allocation10 + $0x30] sm:$0xff] }
 0x27c   :  { %3602 = vst [vmem:[#allocation20_spill] sm:$0xff] %v2954_v13  ;;  %1069 = vmatpush.msrb.mxu2 %v2954_v13  ;;  %1050 = vmatpush.msra.mxu1 %v2961_v19 }
 0x27d   :  { %2122 = vtanh.f32 %v751_v20  ;;  %3603 = vst [vmem:[#allocation21_spill] sm:$0xff] %v2958_v16 }
 0x27e   :  { %3604 = vst [vmem:[#allocation31_spill] sm:$0xff] %v2961_v19  ;;  %1070 = vmatpush.msrb.mxu2 %v2963_v22 }
 0x27f   :  { %3605 = vst [vmem:[#allocation38_spill] sm:$0xff] %v2963_v22 }
 0x283   :  { %v2123_v25 = vpop.eup %2122 }
 0x284   :  { %v753_v51 = vmul.f32 0.5, %v2123_v25  ;;  %v756_v52 = vrot.slane %v2123_v25, 1  ;;  %v765_v58 = vrot.slane %v2123_v25, 2  ;;  %v760_v63 = vrot.slane %v2123_v25, 3  ;;  %v2967_v25 = vld [vmem:[#allocation10 + $0x38] sm:$0xff] }
 0x285   :  { %3606 = vst [vmem:[#allocation22_spill] sm:$0xff] %v2967_v25 }
 0x286   :  { %v754_v54 = vadd.f32 0.5, %v753_v51  ;;  %v758_v55 = vmul.f32 0.5, %v756_v52  ;;  %v762_v2 = vmul.f32 0.5, %v760_v63  ;;  %v2970_v51 = vld [vmem:[#allocation10 + $0x8] sm:$0xff]  ;;  %v2972_v52 = vld [vmem:[#allocation10 + $0x10] sm:$0xff] }
 0x287   :  { %3607 = vst [vmem:[#allocation23_spill] sm:$0xff] %v2970_v51  ;;  %1051 = vmatpush.msra.mxu1 %v2970_v51  ;;  %1071 = vmatpush.msrb.mxu2 %v2972_v52 }
 0x288   :  { %v759_v57 = vadd.f32 0.5, %v758_v55  ;;  %v767_v61 = vmul.f32 %v765_v58, %v754_v54  ;;  %v763_v3 = vadd.f32 0.5, %v762_v2  ;;  %3608 = vst [vmem:[#allocation33_spill] sm:$0xff] %v2972_v52  ;;  %v2976_v54 = vld [vmem:[#allocation10 + $0x18] sm:$0xff] }
 0x289   :  { %3609 = vst [vmem:[#allocation39_spill] sm:$0xff] %v2976_v54 }
 0x28a   :  { %v764_v60 = vmul.f32 %v759_v57, %v657_v24  ;;  %v2915_v24 = vld [vmem:[#allocation10 + $0xd8] sm:$0xff] }
 0x28b   :  { %1085 = vmatpush.msrb.mxu3 %v2915_v24 }
 0x28c   :  { %v2826_v0 = vadd.f32 %v767_v61, %v764_v60 }
 0x28d   :  { %1086 = vmatpush.msrb.mxu3 %v2927_v48 }
 0x28e   :  { %2124 = vtanh.f32 %v2826_v0 }
 0x28f   :  { %1087 = vmatpush.msrb.mxu3 %v2939_v1 }
 0x291   :  { %1088 = vmatpush.msrb.mxu3 %v2949_v10 }
 0x293   :  { %1089 = vmatpush.msrb.mxu3 %v2958_v16 }
 0x294   :  { %v2125_v5 = vpop.eup %2124 }
 0x295   :  { %v770_v6 = vmul.f32 %v2125_v5, %v763_v3  ;;  %1090 = vmatpush.msrb.mxu3 %v2967_v25  ;;  %v773_v5 = vld [vmem:[#allocation2 + $0x3] ss:$8 sm:$0xf] }
 0x297   :  { %771 = vst [vmem:[#allocation3] sm:$0x1] %v770_v6  ;;  %854 = vmatmul.f32.vlgmr.msrb.gmra.mxu0 %v770_v6  ;;  %874 = vmatmul.f32.vlgmr.msrb.gmra.mxu1 %v770_v6 }
 0x298   :  { %894 = vmatmul.f32.vlgmr.msra.gmra.mxu2 %v770_v6  ;;  %914 = vmatmul.f32.vlgmr.msra.gmra.mxu3 %v770_v6 }
 0x299   :  { %1091 = vmatpush.msrb.mxu3 %v2976_v54  ;;  %1214 = vmatpush.msrb.mxu1 %v2829_v8 }
 0x29a   :  { %1234 = vmatpush.msra.mxu2 %v2831_v9 }
 0x29b   :  { %1254 = vmatpush.msra.mxu3 %v2833_v11  ;;  %1215 = vmatpush.msrb.mxu1 %v2838_v12 }
 0x29c   :  { %1235 = vmatpush.msra.mxu2 %v2840_v37 }
 0x29d   :  { %1255 = vmatpush.msra.mxu3 %v2842_v40  ;;  %1216 = vmatpush.msrb.mxu1 %v2847_v42 }
 0x29e   :  { %1236 = vmatpush.msra.mxu2 %v2849_v43 }
 0x29f   :  { %1256 = vmatpush.msra.mxu3 %v2851_v44  ;;  %1217 = vmatpush.msrb.mxu1 %v2856_v45 }
 0x2a0   :  { %1237 = vmatpush.msra.mxu2 %v2858_v46 }
 0x2a1   :  { %1257 = vmatpush.msra.mxu3 %v2860_v47  ;;  %1218 = vmatpush.msrb.mxu1 %v2864_v50 }
 0x2a2   :  { %1238 = vmatpush.msra.mxu2 %v2866_v53 }
 0x2a3   :  { %1258 = vmatpush.msra.mxu3 %v2868_v28  ;;  %1219 = vmatpush.msrb.mxu1 %v2871_v18 }
 0x2a4   :  { %1239 = vmatpush.msra.mxu2 %v2873_v21 }
 0x2a5   :  { %1259 = vmatpush.msra.mxu3 %v2877_v17  ;;  %1220 = vmatpush.msrb.mxu1 %v2880_v27 }
 0x2a6   :  { %1240 = vmatpush.msra.mxu2 %v2882_v29 }
 0x2a7   :  { %1260 = vmatpush.msra.mxu3 %v2886_v30  ;;  %1221 = vmatpush.msrb.mxu1 %v2889_v32 }
 0x2a8   :  { %1241 = vmatpush.msra.mxu2 %v2891_v14 }
 0x2a9   :  { %1261 = vmatpush.msra.mxu3 %v2895_v33  ;;  %1222 = vmatpush.msrb.mxu1 %v2898_v36 }
 0x2aa   :  { %1242 = vmatpush.msra.mxu2 %v2900_v38 }
 0x2ab   :  { %1262 = vmatpush.msra.mxu3 %v2904_v41  ;;  %1223 = vmatpush.msrb.mxu1 %v2907_v56 }
 0x2ac   :  { %1243 = vmatpush.msra.mxu2 %v2909_v35 }
 0x2ad   :  { %1263 = vmatpush.msra.mxu3 %v2915_v24  ;;  %1224 = vmatpush.msrb.mxu1 %v2920_v31 }
 0x2ae   :  { %1244 = vmatpush.msra.mxu2 %v2922_v34 }
 0x2af   :  { %1264 = vmatpush.msra.mxu3 %v2927_v48  ;;  %1225 = vmatpush.msrb.mxu1 %v2932_v59 }
 0x2b0   :  { %1245 = vmatpush.msra.mxu2 %v2934_v62 }
 0x2b1   :  { %1265 = vmatpush.msra.mxu3 %v2939_v1  ;;  %1226 = vmatpush.msrb.mxu1 %v2942_v4 }
 0x2b2   :  { %1246 = vmatpush.msra.mxu2 %v2944_v7 }
 0x2b3   :  { %1266 = vmatpush.msra.mxu3 %v2949_v10  ;;  %1227 = vmatpush.msrb.mxu1 %v2952_v15 }
 0x2b4   :  { %1247 = vmatpush.msra.mxu2 %v2954_v13 }
 0x2b5   :  { %1267 = vmatpush.msra.mxu3 %v2958_v16  ;;  %1228 = vmatpush.msrb.mxu1 %v2961_v19 }
 0x2b6   :  { %1248 = vmatpush.msra.mxu2 %v2963_v22 }
 0x2b7   :  { %1268 = vmatpush.msra.mxu3 %v2967_v25  ;;  %1229 = vmatpush.msrb.mxu1 %v2970_v51 }
 0x2b8   :  { %1249 = vmatpush.msra.mxu2 %v2972_v52 }
 0x2b9   :  { %1269 = vmatpush.msra.mxu3 %v2976_v54 }
 0x314   :  { %v875_v20 = vpop.f32.mrf.mxu1  ;;  %v855_v63 = vpop.f32.mrf.mxu0 }
 0x315   :  { %v922_v55 = vrot.slane %v875_v20, 7 }
 0x317   :  { %v925_v2 = vsel %vm514_vm4, %v855_v63, %v922_v55 }
 0x31b   :  { %v895_v57 = vpop.f32.mrf.mxu2  ;;  %v915_v58 = vpop.f32.mrf.mxu3 }
 0x31c   :  { %v923_v60 = vrot.slane %v895_v57, 6  ;;  %v924_v61 = vrot.slane %v915_v58, 5 }
 0x31e   :  { %v926_v3 = vsel %vm516_vm3, %v923_v60, %v924_v61 }
 0x31f   :  { %v927_v6 = vsel %vm518_vm5, %v925_v2, %v926_v3 }
 0x320   :  { %v929_v20 = vadd.f32 %v927_v6, %v773_v5 }
 0x322   :  { %2126 = vtanh.f32 %v929_v20 }
 0x328   :  { %v2127_v55 = vpop.eup %2126 }
 0x329   :  { %v931_v57 = vmul.f32 0.5, %v2127_v55  ;;  %v934_v58 = vrot.slane %v2127_v55, 1  ;;  %v943_v2 = vrot.slane %v2127_v55, 2  ;;  %v938_v6 = vrot.slane %v2127_v55, 3 }
 0x32b   :  { %v932_v60 = vadd.f32 0.5, %v931_v57  ;;  %v936_v61 = vmul.f32 0.5, %v934_v58 }
 0x32d   :  { %v937_v63 = vadd.f32 0.5, %v936_v61  ;;  %v945_v5 = vmul.f32 %v943_v2, %v932_v60  ;;  %v3085_v60 = vld [vmem:[#allocation10 + $0x1e0] sm:$0xff] }
 0x32e   :  { %1194 = vmatpush.msrb.mxu0 %v3085_v60  ;;  %v3088_v61 = vld [vmem:[#allocation10 + $0x1c0] sm:$0xff] }
 0x32f   :  { %v942_v3 = vmul.f32 %v937_v63, %v2826_v0  ;;  %v940_v0 = vmul.f32 0.5, %v938_v6  ;;  %v3091_v63 = vld [vmem:[#allocation10 + $0x1a0] sm:$0xff] }
 0x330   :  { %1195 = vmatpush.msrb.mxu0 %v3088_v61  ;;  %v3094_v2 = vld [vmem:[#allocation10 + $0x180] sm:$0xff] }
 0x331   :  { %v3017_v20 = vadd.f32 %v945_v5, %v942_v3  ;;  %v941_v55 = vadd.f32 0.5, %v940_v0  ;;  %v3096_v3 = vld [vmem:[#allocation10 + $0x160] sm:$0xff] }
 0x332   :  { %1196 = vmatpush.msrb.mxu0 %v3091_v63  ;;  %v3099_v5 = vld [vmem:[#allocation10 + $0x140] sm:$0xff] }
 0x333   :  { %2128 = vtanh.f32 %v3017_v20  ;;  %v3102_v6 = vld [vmem:[#allocation10 + $0x120] sm:$0xff] }
 0x334   :  { %1197 = vmatpush.msrb.mxu0 %v3094_v2  ;;  %v3105_v0 = vld [vmem:[#allocation10 + $0x100] sm:$0xff] }
 0x336   :  { %1198 = vmatpush.msrb.mxu0 %v3096_v3 }
 0x338   :  { %1199 = vmatpush.msrb.mxu0 %v3099_v5 }
 0x339   :  { %v2129_v57 = vpop.eup %2128 }
 0x33a   :  { %v948_v58 = vmul.f32 %v2129_v57, %v941_v55  ;;  %1200 = vmatpush.msrb.mxu0 %v3102_v6  ;;  %v3108_v55 = vld [vmem:[#allocation10 + $0xe0] sm:$0xff] }
 0x33b   :  { %v3111_v57 = vld [vmem:[#allocation10 + $0xc0] sm:$0xff] }
 0x33c   :  { %949 = vst [vmem:[#allocation3 + $0x1] sm:$0x1] %v948_v58  ;;  %1032 = vmatmul.f32.vlgmr.msra.gmra.mxu0 %v948_v58  ;;  %1052 = vmatmul.f32.vlgmr.msra.gmra.mxu1 %v948_v58 }
 0x33d   :  { %1072 = vmatmul.f32.vlgmr.msrb.gmra.mxu2 %v948_v58  ;;  %1092 = vmatmul.f32.vlgmr.msrb.gmra.mxu3 %v948_v58  ;;  %v3114_v58 = vld [vmem:[#allocation10 + $0xa0] sm:$0xff] }
 0x33e   :  { %1392 = vmatpush.msra.mxu1 %v2829_v8  ;;  %1412 = vmatpush.msrb.mxu2 %v2831_v9 }
 0x33f   :  { %1432 = vmatpush.msrb.mxu3 %v2833_v11  ;;  %1201 = vmatpush.msrb.mxu0 %v3105_v0 }
 0x340   :  { %1393 = vmatpush.msra.mxu1 %v2838_v12  ;;  %1413 = vmatpush.msrb.mxu2 %v2840_v37 }
 0x341   :  { %1433 = vmatpush.msrb.mxu3 %v2842_v40  ;;  %1202 = vmatpush.msrb.mxu0 %v3108_v55 }
 0x342   :  { %1394 = vmatpush.msra.mxu1 %v2847_v42  ;;  %1414 = vmatpush.msrb.mxu2 %v2849_v43 }
 0x343   :  { %1434 = vmatpush.msrb.mxu3 %v2851_v44  ;;  %1203 = vmatpush.msrb.mxu0 %v3111_v57 }
 0x344   :  { %1395 = vmatpush.msra.mxu1 %v2856_v45  ;;  %1415 = vmatpush.msrb.mxu2 %v2858_v46 }
 0x345   :  { %1435 = vmatpush.msrb.mxu3 %v2860_v47  ;;  %1204 = vmatpush.msrb.mxu0 %v3114_v58 }
 0x346   :  { %1396 = vmatpush.msra.mxu1 %v2864_v50  ;;  %1416 = vmatpush.msrb.mxu2 %v2866_v53 }
 0x347   :  { %1436 = vmatpush.msrb.mxu3 %v2868_v28  ;;  %1205 = vmatpush.msrb.mxu0 %v3117_v26 }
 0x348   :  { %1397 = vmatpush.msra.mxu1 %v2871_v18  ;;  %1417 = vmatpush.msrb.mxu2 %v2873_v21 }
 0x349   :  { %1437 = vmatpush.msrb.mxu3 %v2877_v17 }
 0x34a   :  { %1398 = vmatpush.msra.mxu1 %v2880_v27  ;;  %1418 = vmatpush.msrb.mxu2 %v2882_v29 }
 0x34b   :  { %1438 = vmatpush.msrb.mxu3 %v2886_v30 }
 0x34c   :  { %1399 = vmatpush.msra.mxu1 %v2889_v32  ;;  %1419 = vmatpush.msrb.mxu2 %v2891_v14 }
 0x34d   :  { %1439 = vmatpush.msrb.mxu3 %v2895_v33 }
 0x34e   :  { %1400 = vmatpush.msra.mxu1 %v2898_v36  ;;  %1420 = vmatpush.msrb.mxu2 %v2900_v38 }
 0x34f   :  { %1440 = vmatpush.msrb.mxu3 %v2904_v41 }
 0x350   :  { %1401 = vmatpush.msra.mxu1 %v2907_v56  ;;  %1421 = vmatpush.msrb.mxu2 %v2909_v35 }
 0x351   :  { %1441 = vmatpush.msrb.mxu3 %v2915_v24 }
 0x352   :  { %1402 = vmatpush.msra.mxu1 %v2920_v31  ;;  %1422 = vmatpush.msrb.mxu2 %v2922_v34 }
 0x353   :  { %1442 = vmatpush.msrb.mxu3 %v2927_v48 }
 0x354   :  { %1403 = vmatpush.msra.mxu1 %v2932_v59  ;;  %1423 = vmatpush.msrb.mxu2 %v2934_v62 }
 0x355   :  { %1443 = vmatpush.msrb.mxu3 %v2939_v1 }
 0x356   :  { %1404 = vmatpush.msra.mxu1 %v2942_v4  ;;  %1424 = vmatpush.msrb.mxu2 %v2944_v7  ;;  %v951_v7 = vld [vmem:[#allocation2 + $0x4] ss:$8 sm:$0xf] }
 0x357   :  { %1444 = vmatpush.msrb.mxu3 %v2949_v10 }
 0x358   :  { %1405 = vmatpush.msra.mxu1 %v2952_v15  ;;  %1425 = vmatpush.msrb.mxu2 %v2954_v13 }
 0x359   :  { %1445 = vmatpush.msrb.mxu3 %v2958_v16 }
 0x35a   :  { %1406 = vmatpush.msra.mxu1 %v2961_v19  ;;  %1426 = vmatpush.msrb.mxu2 %v2963_v22 }
 0x35b   :  { %1446 = vmatpush.msrb.mxu3 %v2967_v25 }
 0x35c   :  { %1407 = vmatpush.msra.mxu1 %v2970_v51  ;;  %1427 = vmatpush.msrb.mxu2 %v2972_v52 }
 0x35d   :  { %1447 = vmatpush.msrb.mxu3 %v2976_v54  ;;  %v3120_v54 = vld [vmem:[#allocation10 + $0x60] sm:$0xff] }
 0x35e   :  { %1206 = vmatpush.msrb.mxu0 %v3120_v54 }
 0x360   :  { %1207 = vmatpush.msrb.mxu0 %v2911_v39 }
 0x362   :  { %1208 = vmatpush.msrb.mxu0 %v2917_v23 }
 0x364   :  { %1209 = vmatpush.msrb.mxu0 %v2929_v49 }
 0x366   :  { %1372 = vmatpush.msra.mxu0 %v3085_v60 }
 0x368   :  { %1373 = vmatpush.msra.mxu0 %v3088_v61 }
 0x36a   :  { %1374 = vmatpush.msra.mxu0 %v3091_v63 }
 0x36c   :  { %1375 = vmatpush.msra.mxu0 %v3094_v2 }
 0x36e   :  { %1376 = vmatpush.msra.mxu0 %v3096_v3 }
 0x370   :  { %1377 = vmatpush.msra.mxu0 %v3099_v5 }
 0x372   :  { %1378 = vmatpush.msra.mxu0 %v3102_v6 }
 0x374   :  { %1379 = vmatpush.msra.mxu0 %v3105_v0 }
 0x376   :  { %1380 = vmatpush.msra.mxu0 %v3108_v55 }
 0x378   :  { %1381 = vmatpush.msra.mxu0 %v3111_v57 }
 0x37a   :  { %1382 = vmatpush.msra.mxu0 %v3114_v58 }
 0x37c   :  { %1383 = vmatpush.msra.mxu0 %v3117_v26 }
 0x37e   :  { %1384 = vmatpush.msra.mxu0 %v3120_v54 }
 0x380   :  { %1385 = vmatpush.msra.mxu0 %v2911_v39 }
 0x382   :  { %1386 = vmatpush.msra.mxu0 %v2917_v23 }
 0x384   :  { %1387 = vmatpush.msra.mxu0 %v2929_v49 }
 0x3b9   :  { %v1053_v52 = vpop.f32.mrf.mxu1  ;;  %v1033_v13 = vpop.f32.mrf.mxu0 }
 0x3ba   :  { %v1100_v51 = vrot.slane %v1053_v52, 7 }
 0x3bc   :  { %v1103_v15 = vsel %vm514_vm4, %v1033_v13, %v1100_v51 }
 0x3c0   :  { %v1073_v25 = vpop.f32.mrf.mxu2  ;;  %v1093_v22 = vpop.f32.mrf.mxu3 }
 0x3c1   :  { %v1101_v19 = vrot.slane %v1073_v25, 6  ;;  %v1102_v16 = vrot.slane %v1093_v22, 5 }
 0x3c3   :  { %v1104_v10 = vsel %vm516_vm3, %v1101_v19, %v1102_v16 }
 0x3c4   :  { %v1105_v4 = vsel %vm518_vm5, %v1103_v15, %v1104_v10 }
 0x3c5   :  { %v1107_v1 = vadd.f32 %v1105_v4, %v951_v7 }
 0x3c7   :  { %2130 = vtanh.f32 %v1107_v1 }
 0x3cd   :  { %v2131_v22 = vpop.eup %2130 }
 0x3ce   :  { %v1109_v13 = vmul.f32 0.5, %v2131_v22  ;;  %v1112_v16 = vrot.slane %v2131_v22, 1  ;;  %v1121_v7 = vrot.slane %v2131_v22, 2  ;;  %v1116_v15 = vrot.slane %v2131_v22, 3 }
 0x3d0   :  { %v1110_v19 = vadd.f32 0.5, %v1109_v13  ;;  %v1114_v25 = vmul.f32 0.5, %v1112_v16  ;;  %v1118_v52 = vmul.f32 0.5, %v1116_v15 }
 0x3d2   :  { %v1115_v4 = vadd.f32 0.5, %v1114_v25  ;;  %v1123_v10 = vmul.f32 %v1121_v7, %v1110_v19  ;;  %v1119_v13 = vadd.f32 0.5, %v1118_v52 }
 0x3d4   :  { %v1120_v1 = vmul.f32 %v1115_v4, %v3017_v20 }
 0x3d6   :  { %v3142_v51 = vadd.f32 %v1123_v10, %v1120_v1 }
 0x3d8   :  { %2132 = vtanh.f32 %v3142_v51 }
 0x3de   :  { %v2133_v16 = vpop.eup %2132 }
 0x3df   :  { %v1126_v20 = vmul.f32 %v2133_v16, %v1119_v13 }
 0x3e1   :  { %1127 = vst [vmem:[#allocation3 + $0x2] sm:$0x1] %v1126_v20  ;;  %1210 = vmatmul.f32.vlgmr.msrb.gmra.mxu0 %v1126_v20  ;;  %1230 = vmatmul.f32.vlgmr.msrb.gmra.mxu1 %v1126_v20 }
 0x3e2   :  { %1250 = vmatmul.f32.vlgmr.msra.gmra.mxu2 %v1126_v20  ;;  %1270 = vmatmul.f32.vlgmr.msra.gmra.mxu3 %v1126_v20 }
 0x3e3   :  { %1550 = vmatpush.msrb.mxu0 %v3085_v60  ;;  %1570 = vmatpush.msrb.mxu1 %v2829_v8  ;;  %v3610_v8 = vld [vmem:[#allocation36_spill] sm:$0xff] }
 0x3e4   :  { %1590 = vmatpush.msra.mxu2 %v2831_v9  ;;  %1610 = vmatpush.msra.mxu3 %v2833_v11  ;;  %v3611_v9 = vld [vmem:[#allocation18_spill] sm:$0xff]  ;;  %v3612_v11 = vld [vmem:[#allocation19_spill] sm:$0xff] }
 0x3e5   :  { %1551 = vmatpush.msrb.mxu0 %v3088_v61  ;;  %1571 = vmatpush.msrb.mxu1 %v2838_v12  ;;  %v3613_v12 = vld [vmem:[#allocation28_spill] sm:$0xff] }
 0x3e6   :  { %1591 = vmatpush.msra.mxu2 %v2840_v37  ;;  %1611 = vmatpush.msra.mxu3 %v2842_v40  ;;  %v3614_v37 = vld [vmem:[#allocation37_spill] sm:$0xff]  ;;  %v3615_v40 = vld [vmem:[#allocation20_spill] sm:$0xff] }
 0x3e7   :  { %1552 = vmatpush.msrb.mxu0 %v3091_v63  ;;  %1572 = vmatpush.msrb.mxu1 %v2847_v42  ;;  %v3616_v42 = vld [vmem:[#allocation21_spill] sm:$0xff] }
 0x3e8   :  { %1592 = vmatpush.msra.mxu2 %v2849_v43  ;;  %1612 = vmatpush.msra.mxu3 %v2851_v44  ;;  %v3617_v43 = vld [vmem:[#allocation31_spill] sm:$0xff]  ;;  %v3618_v44 = vld [vmem:[#allocation38_spill] sm:$0xff] }
 0x3e9   :  { %1553 = vmatpush.msrb.mxu0 %v3094_v2  ;;  %1573 = vmatpush.msrb.mxu1 %v2856_v45  ;;  %v3619_v45 = vld [vmem:[#allocation22_spill] sm:$0xff] }
 0x3ea   :  { %1593 = vmatpush.msra.mxu2 %v2858_v46  ;;  %1613 = vmatpush.msra.mxu3 %v2860_v47  ;;  %v3620_v46 = vld [vmem:[#allocation23_spill] sm:$0xff]  ;;  %v3621_v47 = vld [vmem:[#allocation33_spill] sm:$0xff] }
 0x3eb   :  { %1554 = vmatpush.msrb.mxu0 %v3096_v3  ;;  %1574 = vmatpush.msrb.mxu1 %v2864_v50  ;;  %v3622_v50 = vld [vmem:[#allocation39_spill] sm:$0xff] }
 0x3ec   :  { %1594 = vmatpush.msra.mxu2 %v2866_v53  ;;  %1614 = vmatpush.msra.mxu3 %v2868_v28 }
 0x3ed   :  { %1555 = vmatpush.msrb.mxu0 %v3099_v5  ;;  %1575 = vmatpush.msrb.mxu1 %v2871_v18 }
 0x3ee   :  { %1595 = vmatpush.msra.mxu2 %v2873_v21  ;;  %1615 = vmatpush.msra.mxu3 %v2877_v17 }
 0x3ef   :  { %1556 = vmatpush.msrb.mxu0 %v3102_v6  ;;  %1576 = vmatpush.msrb.mxu1 %v2880_v27 }
 0x3f0   :  { %1596 = vmatpush.msra.mxu2 %v2882_v29  ;;  %1616 = vmatpush.msra.mxu3 %v2886_v30 }
 0x3f1   :  { %1557 = vmatpush.msrb.mxu0 %v3105_v0  ;;  %1577 = vmatpush.msrb.mxu1 %v2889_v32 }
 0x3f2   :  { %1597 = vmatpush.msra.mxu2 %v2891_v14  ;;  %1617 = vmatpush.msra.mxu3 %v2895_v33  ;;  %v1129_v14 = vld [vmem:[#allocation2 + $0x5] ss:$8 sm:$0xf] }
 0x3f3   :  { %1558 = vmatpush.msrb.mxu0 %v3108_v55  ;;  %1578 = vmatpush.msrb.mxu1 %v2898_v36 }
 0x3f4   :  { %1598 = vmatpush.msra.mxu2 %v2900_v38  ;;  %1618 = vmatpush.msra.mxu3 %v2904_v41 }
 0x3f5   :  { %1559 = vmatpush.msrb.mxu0 %v3111_v57  ;;  %1579 = vmatpush.msrb.mxu1 %v2907_v56 }
 0x3f6   :  { %1599 = vmatpush.msra.mxu2 %v2909_v35  ;;  %1619 = vmatpush.msra.mxu3 %v2915_v24 }
 0x3f7   :  { %1560 = vmatpush.msrb.mxu0 %v3114_v58  ;;  %1580 = vmatpush.msrb.mxu1 %v2920_v31 }
 0x3f8   :  { %1600 = vmatpush.msra.mxu2 %v2922_v34  ;;  %1620 = vmatpush.msra.mxu3 %v2927_v48 }
 0x3f9   :  { %1561 = vmatpush.msrb.mxu0 %v3117_v26  ;;  %1581 = vmatpush.msrb.mxu1 %v2932_v59 }
 0x3fa   :  { %1601 = vmatpush.msra.mxu2 %v2934_v62  ;;  %1621 = vmatpush.msra.mxu3 %v3610_v8 }
 0x3fb   :  { %1562 = vmatpush.msrb.mxu0 %v3120_v54  ;;  %1582 = vmatpush.msrb.mxu1 %v3611_v9 }
 0x3fc   :  { %1602 = vmatpush.msra.mxu2 %v3612_v11  ;;  %1622 = vmatpush.msra.mxu3 %v3613_v12  ;;  %v3237_v12 = vld [vmem:[#allocation10 + $0x1e8] sm:$0xff] }
 0x3fd   :  { %1563 = vmatpush.msrb.mxu0 %v2911_v39  ;;  %1583 = vmatpush.msrb.mxu1 %v3614_v37  ;;  %v3239_v37 = vld [vmem:[#allocation10 + $0x1f0] sm:$0xff] }
 0x3fe   :  { %1603 = vmatpush.msra.mxu2 %v3615_v40  ;;  %1623 = vmatpush.msra.mxu3 %v3616_v42  ;;  %v3241_v40 = vld [vmem:[#allocation10 + $0x1f8] sm:$0xff]  ;;  %v3246_v42 = vld [vmem:[#allocation10 + $0x1c8] sm:$0xff] }
 0x3ff   :  { %1564 = vmatpush.msrb.mxu0 %v2917_v23  ;;  %1584 = vmatpush.msrb.mxu1 %v3617_v43  ;;  %v3248_v43 = vld [vmem:[#allocation10 + $0x1d0] sm:$0xff] }
 0x400   :  { %1604 = vmatpush.msra.mxu2 %v3618_v44  ;;  %1624 = vmatpush.msra.mxu3 %v3619_v45  ;;  %v3250_v44 = vld [vmem:[#allocation10 + $0x1d8] sm:$0xff]  ;;  %v3255_v45 = vld [vmem:[#allocation10 + $0x1a8] sm:$0xff] }
 0x401   :  { %1565 = vmatpush.msrb.mxu0 %v2929_v49  ;;  %1585 = vmatpush.msrb.mxu1 %v3620_v46  ;;  %v3257_v46 = vld [vmem:[#allocation10 + $0x1b0] sm:$0xff] }
 0x402   :  { %1605 = vmatpush.msra.mxu2 %v3621_v47  ;;  %1625 = vmatpush.msra.mxu3 %v3622_v50  ;;  %v3259_v47 = vld [vmem:[#allocation10 + $0x1b8] sm:$0xff]  ;;  %v3264_v50 = vld [vmem:[#allocation10 + $0x188] sm:$0xff] }
 0x45e   :  { %v1231_v53 = vpop.f32.mrf.mxu1  ;;  %v1211_v29 = vpop.f32.mrf.mxu0 }
 0x45f   :  { %v1278_v28 = vrot.slane %v1231_v53, 7  ;;  %v3266_v53 = vld [vmem:[#allocation10 + $0x190] sm:$0xff] }
 0x461   :  { %v1281_v30 = vsel %vm514_vm4, %v1211_v29, %v1278_v28  ;;  %v3268_v28 = vld [vmem:[#allocation10 + $0x198] sm:$0xff]  ;;  %v3281_v29 = vld [vmem:[#allocation10 + $0x150] sm:$0xff] }
 0x465   :  { %v1251_v18 = vpop.f32.mrf.mxu2  ;;  %v1271_v21 = vpop.f32.mrf.mxu3 }
 0x466   :  { %v1279_v17 = vrot.slane %v1251_v18, 6  ;;  %v1280_v27 = vrot.slane %v1271_v21, 5  ;;  %v3272_v18 = vld [vmem:[#allocation10 + $0x168] sm:$0xff]  ;;  %v3274_v21 = vld [vmem:[#allocation10 + $0x170] sm:$0xff] }
 0x468   :  { %v1282_v32 = vsel %vm516_vm3, %v1279_v17, %v1280_v27  ;;  %v3276_v17 = vld [vmem:[#allocation10 + $0x178] sm:$0xff]  ;;  %v3279_v27 = vld [vmem:[#allocation10 + $0x148] sm:$0xff] }
 0x469   :  { %v1283_v33 = vsel %vm518_vm5, %v1281_v30, %v1282_v32  ;;  %v3285_v30 = vld [vmem:[#allocation10 + $0x158] sm:$0xff]  ;;  %v3288_v32 = vld [vmem:[#allocation10 + $0x128] sm:$0xff] }
 0x46a   :  { %v1285_v36 = vadd.f32 %v1283_v33, %v1129_v14  ;;  %v3290_v14 = vld [vmem:[#allocation10 + $0x130] sm:$0xff]  ;;  %v3294_v33 = vld [vmem:[#allocation10 + $0x138] sm:$0xff] }
 0x46c   :  { %2134 = vtanh.f32 %v1285_v36  ;;  %v3297_v36 = vld [vmem:[#allocation10 + $0x108] sm:$0xff] }
 0x472   :  { %v2135_v38 = vpop.eup %2134 }
 0x473   :  { %v1287_v41 = vmul.f32 0.5, %v2135_v38  ;;  %v1290_v56 = vrot.slane %v2135_v38, 1  ;;  %v1299_v23 = vrot.slane %v2135_v38, 2  ;;  %v1294_v48 = vrot.slane %v2135_v38, 3  ;;  %v3299_v38 = vld [vmem:[#allocation10 + $0x110] sm:$0xff] }
 0x475   :  { %v1288_v35 = vadd.f32 0.5, %v1287_v41  ;;  %v1292_v39 = vmul.f32 0.5, %v1290_v56  ;;  %v1296_v59 = vmul.f32 0.5, %v1294_v48  ;;  %v3303_v41 = vld [vmem:[#allocation10 + $0x118] sm:$0xff]  ;;  %v3306_v56 = vld [vmem:[#allocation10 + $0xe8] sm:$0xff]  ;;  %v3325_v48 = vld [vmem:[#allocation10 + $0x20] sm:$0xff] }
 0x477   :  { %v1293_v24 = vadd.f32 0.5, %v1292_v39  ;;  %v1301_v34 = vmul.f32 %v1299_v23, %v1288_v35  ;;  %v1297_v62 = vadd.f32 0.5, %v1296_v59  ;;  %v3308_v35 = vld [vmem:[#allocation10 + $0xf0] sm:$0xff]  ;;  %v3312_v39 = vld [vmem:[#allocation10 + $0xf8] sm:$0xff] }
 0x478   :  { %v3317_v23 = vld [vmem:[#allocation10 + $0xd0] sm:$0xff] }
 0x479   :  { %v1298_v31 = vmul.f32 %v1293_v24, %v3142_v51  ;;  %v3315_v24 = vld [vmem:[#allocation10 + $0xc8] sm:$0xff]  ;;  %v3330_v59 = vld [vmem:[#allocation10 + $0xb0] sm:$0xff] }
 0x47b   :  { %v1302_v49 = vadd.f32 %v1301_v34, %v1298_v31  ;;  %v3319_v31 = vld [vmem:[#allocation10 + $0x40] sm:$0xff]  ;;  %v3323_v34 = vld [vmem:[#allocation10 + $0xd8] sm:$0xff] }
 0x47d   :  { %2136 = vtanh.f32 %v1302_v49 }
 0x483   :  { %v2137_v22 = vpop.eup %2136 }
 0x484   :  { %v1304_v19 = vmul.f32 %v2137_v22, %v1297_v62  ;;  %v3335_v62 = vld [vmem:[#allocation10 + $0xb8] sm:$0xff]  ;;  %v3337_v22 = vld [vmem:[#allocation10] sm:$0xff] }
 0x486   :  { %1305 = vst [vmem:[#allocation3 + $0x3] sm:$0x1] %v1304_v19  ;;  %1388 = vmatmul.f32.vlgmr.msra.gmra.mxu0 %v1304_v19  ;;  %1408 = vmatmul.f32.vlgmr.msra.gmra.mxu1 %v1304_v19 }
 0x487   :  { %1428 = vmatmul.f32.vlgmr.msrb.gmra.mxu2 %v1304_v19  ;;  %1448 = vmatmul.f32.vlgmr.msrb.gmra.mxu3 %v1304_v19  ;;  %v3340_v19 = vld [vmem:[#allocation10 + $0x88] sm:$0xff] }
 0x488   :  { %1727 = vmatpush.msra.mxu0 %v3085_v60  ;;  %1747 = vmatpush.msra.mxu1 %v3237_v12 }
 0x489   :  { %1767 = vmatpush.msrb.mxu2 %v3239_v37  ;;  %1787 = vmatpush.msrb.mxu3 %v3241_v40 }
 0x48a   :  { %1728 = vmatpush.msra.mxu0 %v3088_v61  ;;  %1748 = vmatpush.msra.mxu1 %v3246_v42 }
 0x48b   :  { %1768 = vmatpush.msrb.mxu2 %v3248_v43  ;;  %1788 = vmatpush.msrb.mxu3 %v3250_v44 }
 0x48c   :  { %1729 = vmatpush.msra.mxu0 %v3091_v63  ;;  %1749 = vmatpush.msra.mxu1 %v3255_v45 }
 0x48d   :  { %1769 = vmatpush.msrb.mxu2 %v3257_v46  ;;  %1789 = vmatpush.msrb.mxu3 %v3259_v47 }
 0x48e   :  { %1730 = vmatpush.msra.mxu0 %v3094_v2  ;;  %1750 = vmatpush.msra.mxu1 %v3264_v50 }
 0x48f   :  { %1770 = vmatpush.msrb.mxu2 %v3266_v53  ;;  %1790 = vmatpush.msrb.mxu3 %v3268_v28 }
 0x490   :  { %1731 = vmatpush.msra.mxu0 %v3096_v3  ;;  %1751 = vmatpush.msra.mxu1 %v3272_v18 }
 0x491   :  { %1771 = vmatpush.msrb.mxu2 %v3274_v21  ;;  %1791 = vmatpush.msrb.mxu3 %v3276_v17 }
 0x492   :  { %1732 = vmatpush.msra.mxu0 %v3099_v5  ;;  %1752 = vmatpush.msra.mxu1 %v3279_v27 }
 0x493   :  { %1772 = vmatpush.msrb.mxu2 %v3281_v29  ;;  %1792 = vmatpush.msrb.mxu3 %v3285_v30 }
 0x494   :  { %1733 = vmatpush.msra.mxu0 %v3102_v6  ;;  %1753 = vmatpush.msra.mxu1 %v3288_v32 }
 0x495   :  { %1773 = vmatpush.msrb.mxu2 %v3290_v14  ;;  %1793 = vmatpush.msrb.mxu3 %v3294_v33 }
 0x496   :  { %1734 = vmatpush.msra.mxu0 %v3105_v0  ;;  %1754 = vmatpush.msra.mxu1 %v3297_v36 }
 0x497   :  { %1774 = vmatpush.msrb.mxu2 %v3299_v38  ;;  %1794 = vmatpush.msrb.mxu3 %v3303_v41 }
 0x498   :  { %1735 = vmatpush.msra.mxu0 %v3108_v55  ;;  %v1307_v55 = vld [vmem:[#allocation2 + $0x6] ss:$8 sm:$0xf]  ;;  %1755 = vmatpush.msra.mxu1 %v3306_v56 }
 0x499   :  { %1775 = vmatpush.msrb.mxu2 %v3308_v35  ;;  %1795 = vmatpush.msrb.mxu3 %v3312_v39 }
 0x49a   :  { %1736 = vmatpush.msra.mxu0 %v3111_v57  ;;  %1756 = vmatpush.msra.mxu1 %v3315_v24 }
 0x49b   :  { %1776 = vmatpush.msrb.mxu2 %v3317_v23  ;;  %1796 = vmatpush.msrb.mxu3 %v3323_v34 }
 0x49c   :  { %1737 = vmatpush.msra.mxu0 %v3114_v58 }
 0x49d   :  { %1777 = vmatpush.msrb.mxu2 %v3330_v59  ;;  %1797 = vmatpush.msrb.mxu3 %v3335_v62 }
 0x49e   :  { %1738 = vmatpush.msra.mxu0 %v3117_v26 }
 0x4a0   :  { %1739 = vmatpush.msra.mxu0 %v3120_v54 }
 0x4a2   :  { %1740 = vmatpush.msra.mxu0 %v3319_v31 }
 0x4a4   :  { %1741 = vmatpush.msra.mxu0 %v3325_v48 }
 0x4a6   :  { %1742 = vmatpush.msra.mxu0 %v3337_v22 }
 0x503   :  { %v1409_v60 = vpop.f32.mrf.mxu1  ;;  %v1389_v25 = vpop.f32.mrf.mxu0 }
 0x504   :  { %v1456_v61 = vrot.slane %v1409_v60, 7  ;;  %v3342_v60 = vld [vmem:[#allocation10 + $0x90] sm:$0xff] }
 0x505   :  { %1778 = vmatpush.msrb.mxu2 %v3342_v60 }
 0x506   :  { %v1459_v6 = vsel %vm514_vm4, %v1389_v25, %v1456_v61  ;;  %v3347_v61 = vld [vmem:[#allocation10 + $0x98] sm:$0xff]  ;;  %v3362_v25 = vld [vmem:[#allocation10 + $0x50] sm:$0xff] }
 0x507   :  { %1798 = vmatpush.msrb.mxu3 %v3347_v61 }
 0x50a   :  { %v1429_v63 = vpop.f32.mrf.mxu2  ;;  %v1449_v2 = vpop.f32.mrf.mxu3 }
 0x50b   :  { %v1457_v3 = vrot.slane %v1429_v63, 6  ;;  %v1458_v5 = vrot.slane %v1449_v2, 5  ;;  %v3350_v63 = vld [vmem:[#allocation10 + $0x68] sm:$0xff]  ;;  %v3352_v2 = vld [vmem:[#allocation10 + $0x70] sm:$0xff] }
 0x50c   :  { %1779 = vmatpush.msrb.mxu2 %v3352_v2 }
 0x50d   :  { %v1460_v0 = vsel %vm516_vm3, %v1457_v3, %v1458_v5  ;;  %v3357_v3 = vld [vmem:[#allocation10 + $0x78] sm:$0xff]  ;;  %v3360_v5 = vld [vmem:[#allocation10 + $0x48] sm:$0xff] }
 0x50e   :  { %v1461_v57 = vsel %vm518_vm5, %v1459_v6, %v1460_v0  ;;  %v3366_v6 = vld [vmem:[#allocation10 + $0x58] sm:$0xff]  ;;  %1799 = vmatpush.msrb.mxu3 %v3357_v3  ;;  %v3369_v0 = vld [vmem:[#allocation10 + $0x28] sm:$0xff]  ;;  %1780 = vmatpush.msrb.mxu2 %v3362_v25 }
 0x50f   :  { %v1463_v4 = vadd.f32 %v1461_v57, %v1307_v55  ;;  %v3371_v55 = vld [vmem:[#allocation10 + $0x30] sm:$0xff] }
 0x510   :  { %1800 = vmatpush.msrb.mxu3 %v3366_v6  ;;  %1781 = vmatpush.msrb.mxu2 %v3371_v55 }
 0x511   :  { %2138 = vtanh.f32 %v1463_v4  ;;  %v3375_v4 = vld [vmem:[#allocation10 + $0x38] sm:$0xff] }
 0x512   :  { %1801 = vmatpush.msrb.mxu3 %v3375_v4 }
 0x517   :  { %v2139_v58 = vpop.eup %2138 }
 0x518   :  { %v1465_v26 = vmul.f32 0.5, %v2139_v58  ;;  %v1468_v7 = vrot.slane %v2139_v58, 1  ;;  %v1477_v15 = vrot.slane %v2139_v58, 2  ;;  %v1472_v13 = vrot.slane %v2139_v58, 3  ;;  %v3378_v58 = vld [vmem:[#allocation10 + $0x8] sm:$0xff] }
 0x51a   :  { %v1466_v54 = vadd.f32 0.5, %v1465_v26  ;;  %v1470_v1 = vmul.f32 0.5, %v1468_v7  ;;  %v1474_v20 = vmul.f32 0.5, %v1472_v13  ;;  %v3380_v26 = vld [vmem:[#allocation10 + $0x10] sm:$0xff]  ;;  %v3384_v7 = vld [vmem:[#allocation10 + $0x18] sm:$0xff] }
 0x51b   :  { %1782 = vmatpush.msrb.mxu2 %v3380_v26  ;;  %1802 = vmatpush.msrb.mxu3 %v3384_v7 }
 0x51c   :  { %v1471_v10 = vadd.f32 0.5, %v1470_v1  ;;  %v1479_v52 = vmul.f32 %v1477_v15, %v1466_v54  ;;  %v1475_v8 = vadd.f32 0.5, %v1474_v20 }
 0x51e   :  { %v1476_v51 = vmul.f32 %v1471_v10, %v1302_v49  ;;  %v3328_v49 = vld [vmem:[#allocation10 + $0xa8] sm:$0xff] }
 0x51f   :  { %1757 = vmatpush.msra.mxu1 %v3328_v49 }
 0x520   :  { %v3234_v16 = vadd.f32 %v1479_v52, %v1476_v51 }
 0x521   :  { %1758 = vmatpush.msra.mxu1 %v3340_v19 }
 0x522   :  { %2140 = vtanh.f32 %v3234_v16 }
 0x523   :  { %1759 = vmatpush.msra.mxu1 %v3350_v63 }
 0x525   :  { %1760 = vmatpush.msra.mxu1 %v3360_v5 }
 0x527   :  { %1761 = vmatpush.msra.mxu1 %v3369_v0 }
 0x528   :  { %v2141_v9 = vpop.eup %2140 }
 0x529   :  { %v1482_v11 = vmul.f32 %v2141_v9, %v1475_v8  ;;  %1762 = vmatpush.msra.mxu1 %v3378_v58  ;;  %v1485_v8 = vld [vmem:[#allocation2 + $0x7] ss:$8 sm:$0xf] }
 0x52b   :  { %1483 = vst [vmem:[#allocation3 + $0x4] sm:$0x1] %v1482_v11  ;;  %1566 = vmatmul.f32.vlgmr.msrb.gmra.mxu0 %v1482_v11  ;;  %1586 = vmatmul.f32.vlgmr.msrb.gmra.mxu1 %v1482_v11 }
 0x52c   :  { %1606 = vmatmul.f32.vlgmr.msra.gmra.mxu2 %v1482_v11  ;;  %1626 = vmatmul.f32.vlgmr.msra.gmra.mxu3 %v1482_v11 }
 0x52d   :  { %1926 = vmatpush.msrb.mxu1 %v3237_v12  ;;  %1946 = vmatpush.msra.mxu2 %v3239_v37 }
 0x52e   :  { %1966 = vmatpush.msra.mxu3 %v3241_v40 }
 0x52f   :  { %1927 = vmatpush.msrb.mxu1 %v3246_v42  ;;  %1947 = vmatpush.msra.mxu2 %v3248_v43 }
 0x530   :  { %1967 = vmatpush.msra.mxu3 %v3250_v44 }
 0x531   :  { %1928 = vmatpush.msrb.mxu1 %v3255_v45  ;;  %1948 = vmatpush.msra.mxu2 %v3257_v46 }
 0x532   :  { %1968 = vmatpush.msra.mxu3 %v3259_v47 }
 0x533   :  { %1929 = vmatpush.msrb.mxu1 %v3264_v50  ;;  %1949 = vmatpush.msra.mxu2 %v3266_v53 }
 0x534   :  { %1969 = vmatpush.msra.mxu3 %v3268_v28 }
 0x535   :  { %1930 = vmatpush.msrb.mxu1 %v3272_v18  ;;  %1950 = vmatpush.msra.mxu2 %v3274_v21 }
 0x536   :  { %1970 = vmatpush.msra.mxu3 %v3276_v17  ;;  %v1902_v17 = vld [vmem:[#allocation10 + $0x1e0] sm:$0xff] }
 0x537   :  { %1931 = vmatpush.msrb.mxu1 %v3279_v27  ;;  %1951 = vmatpush.msra.mxu2 %v3281_v29  ;;  %v1898_v27 = vld [vmem:[#allocation10 + $0x1c0] sm:$0xff] }
 0x538   :  { %1971 = vmatpush.msra.mxu3 %v3285_v30  ;;  %1906 = vmatpush.msrb.mxu0 %v1902_v17  ;;  %v1894_v29 = vld [vmem:[#allocation10 + $0x1a0] sm:$0xff] }
 0x539   :  { %1932 = vmatpush.msrb.mxu1 %v3288_v32  ;;  %1952 = vmatpush.msra.mxu2 %v3290_v14  ;;  %v1890_v30 = vld [vmem:[#allocation10 + $0x180] sm:$0xff] }
 0x53a   :  { %1972 = vmatpush.msra.mxu3 %v3294_v33  ;;  %1907 = vmatpush.msrb.mxu0 %v1898_v27  ;;  %v1886_v32 = vld [vmem:[#allocation10 + $0x160] sm:$0xff] }
 0x53b   :  { %1933 = vmatpush.msrb.mxu1 %v3297_v36  ;;  %1953 = vmatpush.msra.mxu2 %v3299_v38  ;;  %v1882_v14 = vld [vmem:[#allocation10 + $0x140] sm:$0xff] }
 0x53c   :  { %1973 = vmatpush.msra.mxu3 %v3303_v41  ;;  %1908 = vmatpush.msrb.mxu0 %v1894_v29  ;;  %v1878_v33 = vld [vmem:[#allocation10 + $0x120] sm:$0xff]  ;;  %v2022_v29 = vld [vmem:[#allocation12 + $0x8] sm:$0xff] }
 0x53d   :  { %1934 = vmatpush.msrb.mxu1 %v3306_v56  ;;  %1954 = vmatpush.msra.mxu2 %v3308_v35  ;;  %v1874_v36 = vld [vmem:[#allocation10 + $0x100] sm:$0xff] }
 0x53e   :  { %1974 = vmatpush.msra.mxu3 %v3312_v39  ;;  %1909 = vmatpush.msrb.mxu0 %v1890_v30  ;;  %v1870_v38 = vld [vmem:[#allocation10 + $0xe0] sm:$0xff] }
 0x53f   :  { %1935 = vmatpush.msrb.mxu1 %v3315_v24  ;;  %1955 = vmatpush.msra.mxu2 %v3317_v23  ;;  %v1866_v41 = vld [vmem:[#allocation10 + $0xc0] sm:$0xff] }
 0x540   :  { %1975 = vmatpush.msra.mxu3 %v3323_v34  ;;  %1910 = vmatpush.msrb.mxu0 %v1886_v32  ;;  %v1862_v56 = vld [vmem:[#allocation10 + $0xa0] sm:$0xff] }
 0x541   :  { %1936 = vmatpush.msrb.mxu1 %v3328_v49  ;;  %1956 = vmatpush.msra.mxu2 %v3330_v59  ;;  %v1858_v35 = vld [vmem:[#allocation10 + $0x80] sm:$0xff] }
 0x542   :  { %1976 = vmatpush.msra.mxu3 %v3335_v62  ;;  %1911 = vmatpush.msrb.mxu0 %v1882_v14  ;;  %v1854_v39 = vld [vmem:[#allocation10 + $0x60] sm:$0xff] }
 0x543   :  { %1937 = vmatpush.msrb.mxu1 %v3340_v19  ;;  %1957 = vmatpush.msra.mxu2 %v3342_v60  ;;  %v1841_v30 = vld [vmem:[#allocation2 + $0x7] ss:$8 sm:$0xf] }
 0x544   :  { %1977 = vmatpush.msra.mxu3 %v3347_v61  ;;  %1912 = vmatpush.msrb.mxu0 %v1878_v33  ;;  %v2021_v33 = vld [vmem:[#allocation12] sm:$0xff] }
 0x545   :  { %1938 = vmatpush.msrb.mxu1 %v3350_v63  ;;  %1958 = vmatpush.msra.mxu2 %v3352_v2  ;;  %v1662_v63 = vld [vmem:[#allocation2 + $0x7] ss:$8 sm:$0xf] }
 0x546   :  { %1978 = vmatpush.msra.mxu3 %v3357_v3  ;;  %1913 = vmatpush.msrb.mxu0 %v1874_v36 }
 0x547   :  { %1939 = vmatpush.msrb.mxu1 %v3360_v5  ;;  %1959 = vmatpush.msra.mxu2 %v3362_v25 }
 0x548   :  { %1979 = vmatpush.msra.mxu3 %v3366_v6  ;;  %1914 = vmatpush.msrb.mxu0 %v1870_v38 }
 0x549   :  { %1940 = vmatpush.msrb.mxu1 %v3369_v0  ;;  %1960 = vmatpush.msra.mxu2 %v3371_v55  ;;  %v3623_v0 = vld [vmem:[#allocation32_spill] sm:$0xff] }
 0x54a   :  { %1980 = vmatpush.msra.mxu3 %v3375_v4  ;;  %1915 = vmatpush.msrb.mxu0 %v1866_v41  ;;  %vm357_vm8 = vcmp.ge.s32.totalorder %v3623_v0, 32  ;;  %vm358_vm9 = vcmp.lt.s32.totalorder %v3623_v0, 96  ;;  %vm360_vm11 = vcmp.ge.s32.totalorder %v3623_v0, 64 }
 0x54b   :  { %1941 = vmatpush.msrb.mxu1 %v3378_v58  ;;  %1961 = vmatpush.msra.mxu2 %v3380_v26  ;;  %vm359_vm10 = vmand %vm357_vm8, %vm358_vm9 }
 0x54c   :  { %1981 = vmatpush.msra.mxu3 %v3384_v7  ;;  %1916 = vmatpush.msrb.mxu0 %v1862_v56  ;;  %vm361_vm12 = vmand %vm360_vm11, %vm358_vm9 }
 0x54e   :  { %1917 = vmatpush.msrb.mxu0 %v1858_v35 }
 0x550   :  { %1918 = vmatpush.msrb.mxu0 %v1854_v39 }
 0x552   :  { %1919 = vmatpush.msrb.mxu0 %v3319_v31 }
 0x554   :  { %1920 = vmatpush.msrb.mxu0 %v3325_v48 }
 0x556   :  { %1921 = vmatpush.msrb.mxu0 %v3337_v22 }
 0x5a8   :  { %v1587_v57 = vpop.f32.mrf.mxu1  ;;  %v1567_v52 = vpop.f32.mrf.mxu0 }
 0x5a9   :  { %v1634_v54 = vrot.slane %v1587_v57, 7 }
 0x5ab   :  { %v1637_v13 = vsel %vm514_vm4, %v1567_v52, %v1634_v54  ;;  %v2036_v52 = vld [vmem:[#allocation12 + $0x78] sm:$0xff] }
 0x5af   :  { %v1607_v1 = vpop.f32.mrf.mxu2  ;;  %v1627_v10 = vpop.f32.mrf.mxu3 }
 0x5b0   :  { %v1635_v15 = vrot.slane %v1607_v1, 6  ;;  %v1636_v51 = vrot.slane %v1627_v10, 5 }
 0x5b2   :  { %v1638_v20 = vsel %vm516_vm3, %v1635_v15, %v1636_v51 }
 0x5b3   :  { %v1639_v9 = vsel %vm518_vm5, %v1637_v13, %v1638_v20  ;;  %v2035_v13 = vld [vmem:[#allocation12 + $0x70] sm:$0xff]  ;;  %v2034_v20 = vld [vmem:[#allocation12 + $0x68] sm:$0xff] }
 0x5b4   :  { %v1641_v11 = vadd.f32 %v1639_v9, %v1485_v8  ;;  %v2033_v8 = vld [vmem:[#allocation12 + $0x60] sm:$0xff]  ;;  %v2032_v9 = vld [vmem:[#allocation12 + $0x58] sm:$0xff] }
 0x5b6   :  { %2142 = vtanh.f32 %v1641_v11  ;;  %v2031_v11 = vld [vmem:[#allocation12 + $0x50] sm:$0xff] }
 0x5bc   :  { %v2143_v12 = vpop.eup %2142 }
 0x5bd   :  { %v1643_v37 = vmul.f32 0.5, %v2143_v12  ;;  %v1646_v40 = vrot.slane %v2143_v12, 1  ;;  %v1655_v45 = vrot.slane %v2143_v12, 2  ;;  %v1650_v50 = vrot.slane %v2143_v12, 3  ;;  %v2030_v12 = vld [vmem:[#allocation12 + $0x48] sm:$0xff] }
 0x5bf   :  { %v1644_v42 = vadd.f32 0.5, %v1643_v37  ;;  %v1648_v43 = vmul.f32 0.5, %v1646_v40  ;;  %v2029_v37 = vld [vmem:[#allocation12 + $0x40] sm:$0xff]  ;;  %v2028_v40 = vld [vmem:[#allocation12 + $0x38] sm:$0xff] }
 0x5c1   :  { %v1649_v44 = vadd.f32 0.5, %v1648_v43  ;;  %v1657_v47 = vmul.f32 %v1655_v45, %v1644_v42  ;;  %v2027_v42 = vld [vmem:[#allocation12 + $0x30] sm:$0xff]  ;;  %v2026_v43 = vld [vmem:[#allocation12 + $0x28] sm:$0xff]  ;;  %v2025_v45 = vld [vmem:[#allocation12 + $0x20] sm:$0xff] }
 0x5c3   :  { %v1654_v46 = vmul.f32 %v1649_v44, %v3234_v16  ;;  %v1652_v16 = vmul.f32 0.5, %v1650_v50 }
 0x5c5   :  { %v3425_v53 = vadd.f32 %v1657_v47, %v1654_v46  ;;  %v1653_v28 = vadd.f32 0.5, %v1652_v16  ;;  %v2024_v47 = vld [vmem:[#allocation12 + $0x18] sm:$0xff] }
 0x5c7   :  { %2144 = vtanh.f32 %v3425_v53 }
 0x5cd   :  { %v2145_v18 = vpop.eup %2144 }
 0x5ce   :  { %v3442_v21 = vmul.f32 %v2145_v18, %v1653_v28  ;;  %v2023_v18 = vld [vmem:[#allocation12 + $0x10] sm:$0xff] }
 0x5d0   :  { %1743 = vmatmul.f32.vlgmr.msra.gmra.mxu0 %v3442_v21  ;;  %1661 = vst [vmem:[#allocation3 + $0x5] sm:$0x1] %v3442_v21  ;;  %1763 = vmatmul.f32.vlgmr.msra.gmra.mxu1 %v3442_v21 }
 0x5d1   :  { %1783 = vmatmul.f32.vlgmr.msrb.gmra.mxu2 %v3442_v21  ;;  %1803 = vmatmul.f32.vlgmr.msrb.gmra.mxu3 %v3442_v21 }
 0x5d2   :  { %2041 = vmatpush.msra.mxu0 %v2036_v52 }
 0x5d4   :  { %2042 = vmatpush.msra.mxu0 %v2035_v13 }
 0x5d6   :  { %2043 = vmatpush.msra.mxu0 %v2034_v20 }
 0x5d8   :  { %2044 = vmatpush.msra.mxu0 %v2033_v8 }
 0x5da   :  { %2045 = vmatpush.msra.mxu0 %v2032_v9 }
 0x5dc   :  { %2046 = vmatpush.msra.mxu0 %v2031_v11 }
 0x5de   :  { %2047 = vmatpush.msra.mxu0 %v2030_v12 }
 0x5e0   :  { %2048 = vmatpush.msra.mxu0 %v2029_v37 }
 0x5e2   :  { %2049 = vmatpush.msra.mxu0 %v2028_v40 }
 0x5e4   :  { %2050 = vmatpush.msra.mxu0 %v2027_v42 }
 0x5e6   :  { %2051 = vmatpush.msra.mxu0 %v2026_v43 }
 0x5e8   :  { %2052 = vmatpush.msra.mxu0 %v2025_v45 }
 0x5ea   :  { %2053 = vmatpush.msra.mxu0 %v2024_v47 }
 0x5ec   :  { %2054 = vmatpush.msra.mxu0 %v2023_v18 }
 0x5ee   :  { %2055 = vmatpush.msra.mxu0 %v2022_v29 }
 0x5f0   :  { %2056 = vmatpush.msra.mxu0 %v2021_v33 }
 0x64d   :  { %v1764_v24 = vpop.f32.mrf.mxu1  ;;  %v1744_v19 = vpop.f32.mrf.mxu0 }
 0x64e   :  { %v1811_v23 = vrot.slane %v1764_v24, 7 }
 0x650   :  { %v1814_v60 = vsel %vm514_vm4, %v1744_v19, %v1811_v23 }
 0x654   :  { %v1784_v34 = vpop.f32.mrf.mxu2  ;;  %v1804_v49 = vpop.f32.mrf.mxu3 }
 0x655   :  { %v1812_v59 = vrot.slane %v1784_v34, 6  ;;  %v1813_v62 = vrot.slane %v1804_v49, 5 }
 0x657   :  { %v1815_v61 = vsel %vm516_vm3, %v1812_v59, %v1813_v62 }
 0x658   :  { %v1816_v2 = vsel %vm518_vm5, %v1814_v60, %v1815_v61 }
 0x659   :  { %v1818_v3 = vadd.f32 %v1816_v2, %v1662_v63 }
 0x65b   :  { %2146 = vtanh.f32 %v1818_v3 }
 0x661   :  { %v2147_v31 = vpop.eup %2146 }
 0x662   :  { %v1820_v5 = vmul.f32 0.5, %v2147_v31  ;;  %v1823_v25 = vrot.slane %v2147_v31, 1  ;;  %v1832_v55 = vrot.slane %v2147_v31, 2  ;;  %v1827_v58 = vrot.slane %v2147_v31, 3  ;;  %v2113_v31 = vld [vmem:[%s3501_s7] ss:$0 sm:$0xff] }
 0x664   :  { %v1821_v48 = vadd.f32 0.5, %v1820_v5  ;;  %v1825_v6 = vmul.f32 0.5, %v1823_v25  ;;  %v1829_v54 = vmul.f32 0.5, %v1827_v58 }
 0x666   :  { %v1826_v22 = vadd.f32 0.5, %v1825_v6  ;;  %v1834_v4 = vmul.f32 %v1832_v55, %v1821_v48  ;;  %v1830_v1 = vadd.f32 0.5, %v1829_v54 }
 0x668   :  { %v1831_v57 = vmul.f32 %v1826_v22, %v3425_v53 }
 0x66a   :  { %v1835_v26 = vadd.f32 %v1834_v4, %v1831_v57 }
 0x66c   :  { %2148 = vtanh.f32 %v1835_v26  ;;  %v3464_v7 = vsel %vm359_vm10, %v1835_v26, %v3425_v53 }
 0x672   :  { %v2149_v10 = vpop.eup %2148 }
 0x673   :  { %v1837_v15 = vmul.f32 %v2149_v10, %v1830_v1 }
 0x675   :  { %v3467_v51 = vsel %vm359_vm10, %v1837_v15, %v3442_v21  ;;  %1840 = vst [vmem:[#allocation3 + $0x6] sm:$0x1] %v1837_v15 }
 0x676   :  { %1922 = vmatmul.f32.vlgmr.msrb.gmra.mxu0 %v3467_v51  ;;  %1942 = vmatmul.f32.vlgmr.msrb.gmra.mxu1 %v3467_v51 }
 0x677   :  { %1962 = vmatmul.f32.vlgmr.msra.gmra.mxu2 %v3467_v51  ;;  %1982 = vmatmul.f32.vlgmr.msra.gmra.mxu3 %v3467_v51 }
 0x6f3   :  { %v1943_v44 = vpop.f32.mrf.mxu1  ;;  %v1923_v21 = vpop.f32.mrf.mxu0 }
 0x6f4   :  { %v1990_v46 = vrot.slane %v1943_v44, 7 }
 0x6f6   :  { %v1993_v17 = vsel %vm514_vm4, %v1923_v21, %v1990_v46 }
 0x6fa   :  { %v1963_v50 = vpop.f32.mrf.mxu2  ;;  %v1983_v53 = vpop.f32.mrf.mxu3 }
 0x6fb   :  { %v1991_v16 = vrot.slane %v1963_v50, 6  ;;  %v1992_v28 = vrot.slane %v1983_v53, 5 }
 0x6fd   :  { %v1994_v27 = vsel %vm516_vm3, %v1991_v16, %v1992_v28 }
 0x6fe   :  { %v1995_v32 = vsel %vm518_vm5, %v1993_v17, %v1994_v27 }
 0x6ff   :  { %v1997_v14 = vadd.f32 %v1995_v32, %v1841_v30 }
 0x701   :  { %2150 = vtanh.f32 %v1997_v14 }
 0x707   :  { %v2151_v36 = vpop.eup %2150 }
 0x708   :  { %v1999_v38 = vmul.f32 0.5, %v2151_v36  ;;  %v2002_v41 = vrot.slane %v2151_v36, 1  ;;  %v2011_v24 = vrot.slane %v2151_v36, 2  ;;  %v2006_v49 = vrot.slane %v2151_v36, 3 }
 0x70a   :  { %v2000_v56 = vadd.f32 0.5, %v1999_v38  ;;  %v2004_v35 = vmul.f32 0.5, %v2002_v41  ;;  %v2008_v19 = vmul.f32 0.5, %v2006_v49 }
 0x70c   :  { %v2005_v39 = vadd.f32 0.5, %v2004_v35  ;;  %v2013_v34 = vmul.f32 %v2011_v24, %v2000_v56  ;;  %v2009_v60 = vadd.f32 0.5, %v2008_v19 }
 0x70e   :  { %v2010_v23 = vmul.f32 %v2005_v39, %v3464_v7 }
 0x710   :  { %v2014_v59 = vadd.f32 %v2013_v34, %v2010_v23 }
 0x712   :  { %2152 = vtanh.f32 %v2014_v59  ;;  %v2018_v62 = vsel %vm361_vm12, %v2014_v59, %v3464_v7 }
 0x713   :  { %2063 = vst [vmem:[%s3503_s9 + $0x1] sm:$0x1] %v2018_v62 }
 0x718   :  { %v2153_v61 = vpop.eup %2152 }
 0x719   :  { %v2016_v63 = vmul.f32 %v2153_v61, %v2009_v60 }
 0x71b   :  { %v2017_v2 = vsel %vm361_vm12, %v2016_v63, %v3467_v51  ;;  %2019 = vst [vmem:[#allocation3 + $0x7] sm:$0x1] %v2016_v63 }
 0x71c   :  { %2062 = vst [vmem:[%s3503_s9] sm:$0x1] %v2017_v2 }
 0x722   :  { %v2020_v3 = vld [vmem:[#allocation3] sm:$0xff] }
 0x723   :  { %2057 = vmatmul.f32.vlgmr.msra.gmra.mxu0 %v2020_v3 }
 0x7a0   :  { %v2058_v5 = vpop.f32.mrf.mxu0 }
 0x7a1   :  { %v2059_v25 = vadd.f32 %v2113_v31, %v2058_v5 }
 0x7a3   :  { %2061 = vst [vmem:[#allocation13] sm:$0xff] %v2059_v25 }
 0x7a4   :  { %2074 = dma.vmem_to_hbm [thread:$0]  %s2070_s21, 128, %s2072_s3, [#allocation6]  }
 0x7a5   :  { %2304 = dma.done.wait [#allocation6], 128  }
 0x7a6   :  { %2305 = vsyncadd [#allocation6], 4294967168 }
 0x7a7   :  { %2083 = vsyncpa [#allocation5], 1 }
 0x7a8   :  { %2084 = vsyncpa [#allocation8], 1 }
 0x7a9   :  { %2085 = vsyncpa [#allocation11], 1 }
 0x7aa   :  { %2086 = vsyncpa [#allocation6], 1 }

</bundles_post_ra>
